<compile_context>
chip_gen: v7x
topology: tpu7x:2x2x1
jax: 0.10.0
libtpu: 0.0.40
codegen_flags: <defaults>
</compile_context>

<pallas_src>
import jax
import jax.numpy as jnp
import numpy as np
from jax.experimental import pallas as pl
from jax.experimental.pallas import tpu as pltpu  # noqa: F401  (TPU backend)

INPUT_SIZE = 10
HIDDEN_SIZE = 15
FC_OUT = 3
BATCH = 4          # hard-coded by hidden.view(num_layers, 2, 4, hidden_size)
SEQ_LEN = 8

# Padded / vreg-aligned layout constants.
BATCH_PAD = 8      # native sublane tile
IN_PAD = 16        # input dim 10 -> 16 (8-row aligned slab section)
HID_PAD = 128      # hidden dim 15 -> one full lane block
GATE_PAD = 128     # each gate (r, z, n) gets its own 128-lane block
GATES = 3 * GATE_PAD  # 384

# Parameter-slab row layout (all section starts are multiples of 8).
WIH_ROW = 0                      # rows 0:16    -> W_ih^T  (real rows 0:10)
WHH_ROW = WIH_ROW + IN_PAD       # rows 16:144  -> W_hh^T  (real rows 16:31)
WFC_ROW = WHH_ROW + HID_PAD      # rows 144:272 -> W_fc^T  (cols 0:3 real)
BGI_ROW = WFC_ROW + HID_PAD      # row 272      -> fused gate bias (r,z,n-input)
BHN_ROW = BGI_ROW + 8            # row 280      -> b_hn (at n-gate lanes 256:271)
BFC_ROW = BHN_ROW + 8            # row 288      -> fc bias (lanes 0:3)
SLAB_ROWS = BFC_ROW + 8          # 296


def _sigmoid(x):
    # Exact sigmoid via a single EUP tanh push (no divide on the serial path).
    return 0.5 * jnp.tanh(0.5 * x) + 0.5


def gru_fc_kernel(x_ref, w_ref, out_ref):
    """Forward-direction GRU over time, then Linear + ReLU on final hidden.

    x_ref:   [T*8, 16]   time-major inputs (batch padded 4->8, input 10->16)
    w_ref:   [296, 384]  packed parameter slab (see row layout above)
    out_ref: [8, 128]    padded output; real result at [:4, :3]
    """
    T = x_ref.shape[0] // BATCH_PAD

    # One-time, aligned views of the parameter slab (all off the serial path).
    wih = w_ref[WIH_ROW:WIH_ROW + IN_PAD, :]                       # [16, 384]
    whh = w_ref[WHH_ROW:WHH_ROW + HID_PAD, :]                      # [128, 384]
    wfc = w_ref[WFC_ROW:WFC_ROW + HID_PAD, 0:GATE_PAD]             # [128, 128]
    bgi = w_ref[BGI_ROW:BGI_ROW + 1, :]                            # [1, 384]
    bhn = w_ref[BHN_ROW:BHN_ROW + 1, 2 * GATE_PAD:3 * GATE_PAD]    # [1, 128]
    bfc = w_ref[BFC_ROW:BFC_ROW + 1, 0:GATE_PAD]                   # [1, 128]

    # Hoisted input projection for ALL timesteps: one matmul, biases folded.
    gi_all = jnp.dot(x_ref[...], wih,
                     preferred_element_type=jnp.float32) + bgi     # [T*8, 384]

    # h0 = None -> zeros; h is exactly one (8,128) vreg, padding stays zero.
    h = jnp.zeros((BATCH_PAD, HID_PAD), jnp.float32)

    # T = 8 is static: fully unrolled so EUP/VPU work of one step interleaves
    # with the MXU latency of the next.
    for t in range(T):
        gi = gi_all[t * BATCH_PAD:(t + 1) * BATCH_PAD, :]          # [8, 384]
        gh = jnp.dot(h, whh, preferred_element_type=jnp.float32)   # [8, 384]

        # r and z in one fused EUP push; all slices are vreg-boundary views.
        rz = _sigmoid(gi[:, 0:2 * GATE_PAD] + gh[:, 0:2 * GATE_PAD])
        r = rz[:, 0:GATE_PAD]
        z = rz[:, GATE_PAD:2 * GATE_PAD]
        n = jnp.tanh(gi[:, 2 * GATE_PAD:] + r * (gh[:, 2 * GATE_PAD:] + bhn))
        h = (1.0 - z) * n + z * h

    # Final hidden (forward direction only) -> Linear(15, 3) -> ReLU.
    y = jnp.dot(h, wfc, preferred_element_type=jnp.float32) + bfc  # [8, 128]
    out_ref[...] = jnp.maximum(y, 0.0)


def init_params(key):
    """Deterministic params in PyTorch layout + the packed kernel slab."""
    H, I = HIDDEN_SIZE, INPUT_SIZE
    k = 1.0 / np.sqrt(H)
    keys = jax.random.split(key, 6)

    # PyTorch GRU params: weight_ih_l0 [3H, I], weight_hh_l0 [3H, H],
    # bias_ih_l0 [3H], bias_hh_l0 [3H]; gate order (r, z, n).
    w_ih = jax.random.uniform(keys[0], (3 * H, I), jnp.float32, -k, k)
    w_hh = jax.random.uniform(keys[1], (3 * H, H), jnp.float32, -k, k)
    b_ih = jax.random.uniform(keys[2], (3 * H,), jnp.float32, -k, k)
    b_hh = jax.random.uniform(keys[3], (3 * H,), jnp.float32, -k, k)
    # fc1: Linear(15, 3) (initialize_weights style: normal(0, 0.01), zero bias)
    w_fc = 0.01 * jax.random.normal(keys[4], (FC_OUT, H), jnp.float32)
    b_fc = jnp.zeros((FC_OUT,), jnp.float32)

    # ---- Pack everything into one (296, 384) slab, per-gate 128-lane blocks.
    slab = np.zeros((SLAB_ROWS, GATES), np.float32)
    w_ih_np = np.asarray(w_ih)
    w_hh_np = np.asarray(w_hh)
    b_ih_np = np.asarray(b_ih)
    b_hh_np = np.asarray(b_hh)
    for g in range(3):
        c0 = g * GATE_PAD
        slab[WIH_ROW:WIH_ROW + I, c0:c0 + H] = w_ih_np[g * H:(g + 1) * H, :].T
        slab[WHH_ROW:WHH_ROW + H, c0:c0 + H] = w_hh_np[g * H:(g + 1) * H, :].T
    # Fused gate bias: [b_ir+b_hr | b_iz+b_hz | b_in]; b_hn stays separate.
    slab[BGI_ROW, 0:H] = b_ih_np[0:H] + b_hh_np[0:H]
    slab[BGI_ROW, GATE_PAD:GATE_PAD + H] = b_ih_np[H:2 * H] + b_hh_np[H:2 * H]
    slab[BGI_ROW, 2 * GATE_PAD:2 * GATE_PAD + H] = b_ih_np[2 * H:3 * H]
    slab[BHN_ROW, 2 * GATE_PAD:2 * GATE_PAD + H] = b_hh_np[2 * H:3 * H]
    # FC weights / bias.
    slab[WFC_ROW:WFC_ROW + H, 0:FC_OUT] = np.asarray(w_fc).T
    slab[BFC_ROW, 0:FC_OUT] = np.asarray(b_fc)

    torch_layout = (w_ih, w_hh, b_ih, b_hh, w_fc, b_fc)
    return jnp.asarray(slab), torch_layout
    # TODO(synk): backward-direction GRU weights are never used in the
    # module's output, so they are intentionally not materialized/computed.


def gru_bidirection_forward(x_bti, slab):
    """x_bti: [4, T, 10] (batch_first=True, like the PyTorch module) -> [4, 3]."""
    B, T, I = x_bti.shape
    x_tbi = jnp.transpose(x_bti, (1, 0, 2)).astype(jnp.float32)    # [T, B, I]
    # Pad batch 4 -> 8 (zero rows) and input 10 -> 16 (zero cols).
    x_pad = jnp.zeros((T, BATCH_PAD, IN_PAD), jnp.float32)
    x_pad = x_pad.at[:, :B, :I].set(x_tbi)
    x_flat = x_pad.reshape(T * BATCH_PAD, IN_PAD)                  # [T*8, 16]

    out_pad = pl.pallas_call(
        gru_fc_kernel,
        out_shape=jax.ShapeDtypeStruct((BATCH_PAD, GATE_PAD), jnp.float32),
    )(x_flat, slab)
    return out_pad[:B, :FC_OUT]


def reference_forward(x_bti, torch_layout):
    """Pure-JAX reference matching PyTorch GRU(forward dir) + Linear + ReLU."""
    w_ih, w_hh, b_ih, b_hh, w_fc, b_fc = torch_layout
    H = HIDDEN_SIZE
    B, T, _ = x_bti.shape
    hi = lambda a, b: jnp.dot(a, b, precision=jax.lax.Precision.HIGHEST)
    h = jnp.zeros((B, H), jnp.float32)
    for t in range(T):
        gi = hi(x_bti[:, t, :], w_ih.T) + b_ih
        gh = hi(h, w_hh.T) + b_hh
        r = jax.nn.sigmoid(gi[:, 0:H] + gh[:, 0:H])
        z = jax.nn.sigmoid(gi[:, H:2 * H] + gh[:, H:2 * H])
        n = jnp.tanh(gi[:, 2 * H:] + r * gh[:, 2 * H:])
        h = (1.0 - z) * n + z * h
    return jnp.maximum(hi(h, w_fc.T) + b_fc, 0.0)


if __name__ == "__main__":
    key = jax.random.PRNGKey(0)
    k_param, k_x = jax.random.split(key)
    slab, torch_layout = init_params(k_param)
    x = jax.random.normal(k_x, (BATCH, SEQ_LEN, INPUT_SIZE), jnp.float32)

    out = gru_bidirection_forward(x, slab)
    jax.block_until_ready(out)
    assert out.shape == (BATCH, FC_OUT)

    ref = reference_forward(x, torch_layout)
    np.testing.assert_allclose(np.asarray(out), np.asarray(ref),
                               rtol=2e-3, atol=2e-3)
    print("KERNEL_OK")
</pallas_src>

<mosaic_0001>
module attributes {stable_mosaic.version = 11 : i64} {
  func.func @gru_fc_kernel(%arg0: memref<64x16xf32, #tpu.memory_space<vmem>>, %arg1: memref<296x384xf32, #tpu.memory_space<vmem>>, %arg2: memref<8x128xf32, #tpu.memory_space<vmem>>) attributes {dimension_semantics = [], scalar_prefetch = 0 : i64, scratch_operands = 0 : i64, tpu.core_type = #tpu.core_type<tc>} {
    %c0 = arith.constant 0 : index
    %c0_0 = arith.constant 0 : index
    %0 = vector.load %arg1[%c0, %c0_0] : memref<296x384xf32, #tpu.memory_space<vmem>>, vector<16x384xf32>
    %c16 = arith.constant 16 : index
    %c0_1 = arith.constant 0 : index
    %1 = vector.load %arg1[%c16, %c0_1] : memref<296x384xf32, #tpu.memory_space<vmem>>, vector<128x384xf32>
    %c144 = arith.constant 144 : index
    %c0_2 = arith.constant 0 : index
    %2 = vector.load %arg1[%c144, %c0_2] : memref<296x384xf32, #tpu.memory_space<vmem>>, vector<128x128xf32>
    %c272 = arith.constant 272 : index
    %c0_3 = arith.constant 0 : index
    %3 = vector.load %arg1[%c272, %c0_3] : memref<296x384xf32, #tpu.memory_space<vmem>>, vector<1x384xf32>
    %c280 = arith.constant 280 : index
    %c256 = arith.constant 256 : index
    %4 = vector.load %arg1[%c280, %c256] : memref<296x384xf32, #tpu.memory_space<vmem>>, vector<1x128xf32>
    %c288 = arith.constant 288 : index
    %c0_4 = arith.constant 0 : index
    %5 = vector.load %arg1[%c288, %c0_4] : memref<296x384xf32, #tpu.memory_space<vmem>>, vector<1x128xf32>
    %c0_5 = arith.constant 0 : index
    %c0_6 = arith.constant 0 : index
    %6 = vector.load %arg0[%c0_5, %c0_6] : memref<64x16xf32, #tpu.memory_space<vmem>>, vector<64x16xf32>
    %cst = arith.constant dense<0.000000e+00> : vector<64x384xf32>
    %7 = tpu.matmul %6, %0, %cst {dimension_numbers = #tpu.dot_dimension_numbers<[1], [0], [0], [1], [0, 0, 1, 1], [], []>} : vector<64x16xf32>, vector<16x384xf32>, vector<64x384xf32> -> vector<64x384xf32>
    %8 = vector.broadcast %3 : vector<1x384xf32> to vector<64x384xf32>
    %9 = arith.addf %7, %8 : vector<64x384xf32>
    %cst_7 = arith.constant 0.000000e+00 : f32
    %10 = vector.broadcast %cst_7 : f32 to vector<8x128xf32>
    %11 = vector.extract_strided_slice %9 {offsets = [0, 0], sizes = [8, 384], strides = [1, 1]} : vector<64x384xf32> to vector<8x384xf32>
    %cst_8 = arith.constant dense<0.000000e+00> : vector<8x384xf32>
    %12 = tpu.matmul %10, %1, %cst_8 {dimension_numbers = #tpu.dot_dimension_numbers<[1], [0], [0], [1], [0, 0, 1, 1], [], []>} : vector<8x128xf32>, vector<128x384xf32>, vector<8x384xf32> -> vector<8x384xf32>
    %13 = vector.extract_strided_slice %11 {offsets = [0, 0], sizes = [8, 256], strides = [1, 1]} : vector<8x384xf32> to vector<8x256xf32>
    %14 = vector.extract_strided_slice %12 {offsets = [0, 0], sizes = [8, 256], strides = [1, 1]} : vector<8x384xf32> to vector<8x256xf32>
    %15 = arith.addf %13, %14 : vector<8x256xf32>
    %cst_9 = arith.constant 5.000000e-01 : f32
    %16 = vector.broadcast %cst_9 : f32 to vector<8x256xf32>
    %17 = arith.mulf %16, %15 : vector<8x256xf32>
    %18 = math.tanh %17 : vector<8x256xf32>
    %cst_10 = arith.constant 5.000000e-01 : f32
    %19 = vector.broadcast %cst_10 : f32 to vector<8x256xf32>
    %20 = arith.mulf %19, %18 : vector<8x256xf32>
    %cst_11 = arith.constant 5.000000e-01 : f32
    %21 = vector.broadcast %cst_11 : f32 to vector<8x256xf32>
    %22 = arith.addf %20, %21 : vector<8x256xf32>
    %23 = vector.extract_strided_slice %22 {offsets = [0, 0], sizes = [8, 128], strides = [1, 1]} : vector<8x256xf32> to vector<8x128xf32>
    %24 = vector.extract_strided_slice %22 {offsets = [0, 128], sizes = [8, 128], strides = [1, 1]} : vector<8x256xf32> to vector<8x128xf32>
    %25 = vector.extract_strided_slice %11 {offsets = [0, 256], sizes = [8, 128], strides = [1, 1]} : vector<8x384xf32> to vector<8x128xf32>
    %26 = vector.extract_strided_slice %12 {offsets = [0, 256], sizes = [8, 128], strides = [1, 1]} : vector<8x384xf32> to vector<8x128xf32>
    %27 = vector.broadcast %4 : vector<1x128xf32> to vector<8x128xf32>
    %28 = arith.addf %26, %27 : vector<8x128xf32>
    %29 = arith.mulf %23, %28 : vector<8x128xf32>
    %30 = arith.addf %25, %29 : vector<8x128xf32>
    %31 = math.tanh %30 : vector<8x128xf32>
    %cst_12 = arith.constant 1.000000e+00 : f32
    %32 = vector.broadcast %cst_12 : f32 to vector<8x128xf32>
    %33 = arith.subf %32, %24 : vector<8x128xf32>
    %34 = arith.mulf %33, %31 : vector<8x128xf32>
    %35 = arith.mulf %24, %10 : vector<8x128xf32>
    %36 = arith.addf %34, %35 : vector<8x128xf32>
    %37 = vector.extract_strided_slice %9 {offsets = [8, 0], sizes = [8, 384], strides = [1, 1]} : vector<64x384xf32> to vector<8x384xf32>
    %cst_13 = arith.constant dense<0.000000e+00> : vector<8x384xf32>
    %38 = tpu.matmul %36, %1, %cst_13 {dimension_numbers = #tpu.dot_dimension_numbers<[1], [0], [0], [1], [0, 0, 1, 1], [], []>} : vector<8x128xf32>, vector<128x384xf32>, vector<8x384xf32> -> vector<8x384xf32>
    %39 = vector.extract_strided_slice %37 {offsets = [0, 0], sizes = [8, 256], strides = [1, 1]} : vector<8x384xf32> to vector<8x256xf32>
    %40 = vector.extract_strided_slice %38 {offsets = [0, 0], sizes = [8, 256], strides = [1, 1]} : vector<8x384xf32> to vector<8x256xf32>
    %41 = arith.addf %39, %40 : vector<8x256xf32>
    %cst_14 = arith.constant 5.000000e-01 : f32
    %42 = vector.broadcast %cst_14 : f32 to vector<8x256xf32>
    %43 = arith.mulf %42, %41 : vector<8x256xf32>
    %44 = math.tanh %43 : vector<8x256xf32>
    %cst_15 = arith.constant 5.000000e-01 : f32
    %45 = vector.broadcast %cst_15 : f32 to vector<8x256xf32>
    %46 = arith.mulf %45, %44 : vector<8x256xf32>
    %cst_16 = arith.constant 5.000000e-01 : f32
    %47 = vector.broadcast %cst_16 : f32 to vector<8x256xf32>
    %48 = arith.addf %46, %47 : vector<8x256xf32>
    %49 = vector.extract_strided_slice %48 {offsets = [0, 0], sizes = [8, 128], strides = [1, 1]} : vector<8x256xf32> to vector<8x128xf32>
    %50 = vector.extract_strided_slice %48 {offsets = [0, 128], sizes = [8, 128], strides = [1, 1]} : vector<8x256xf32> to vector<8x128xf32>
    %51 = vector.extract_strided_slice %37 {offsets = [0, 256], sizes = [8, 128], strides = [1, 1]} : vector<8x384xf32> to vector<8x128xf32>
    %52 = vector.extract_strided_slice %38 {offsets = [0, 256], sizes = [8, 128], strides = [1, 1]} : vector<8x384xf32> to vector<8x128xf32>
    %53 = vector.broadcast %4 : vector<1x128xf32> to vector<8x128xf32>
    %54 = arith.addf %52, %53 : vector<8x128xf32>
    %55 = arith.mulf %49, %54 : vector<8x128xf32>
    %56 = arith.addf %51, %55 : vector<8x128xf32>
    %57 = math.tanh %56 : vector<8x128xf32>
    %cst_17 = arith.constant 1.000000e+00 : f32
    %58 = vector.broadcast %cst_17 : f32 to vector<8x128xf32>
    %59 = arith.subf %58, %50 : vector<8x128xf32>
    %60 = arith.mulf %59, %57 : vector<8x128xf32>
    %61 = arith.mulf %50, %36 : vector<8x128xf32>
    %62 = arith.addf %60, %61 : vector<8x128xf32>
    %63 = vector.extract_strided_slice %9 {offsets = [16, 0], sizes = [8, 384], strides = [1, 1]} : vector<64x384xf32> to vector<8x384xf32>
    %cst_18 = arith.constant dense<0.000000e+00> : vector<8x384xf32>
    %64 = tpu.matmul %62, %1, %cst_18 {dimension_numbers = #tpu.dot_dimension_numbers<[1], [0], [0], [1], [0, 0, 1, 1], [], []>} : vector<8x128xf32>, vector<128x384xf32>, vector<8x384xf32> -> vector<8x384xf32>
    %65 = vector.extract_strided_slice %63 {offsets = [0, 0], sizes = [8, 256], strides = [1, 1]} : vector<8x384xf32> to vector<8x256xf32>
    %66 = vector.extract_strided_slice %64 {offsets = [0, 0], sizes = [8, 256], strides = [1, 1]} : vector<8x384xf32> to vector<8x256xf32>
    %67 = arith.addf %65, %66 : vector<8x256xf32>
    %cst_19 = arith.constant 5.000000e-01 : f32
    %68 = vector.broadcast %cst_19 : f32 to vector<8x256xf32>
    %69 = arith.mulf %68, %67 : vector<8x256xf32>
    %70 = math.tanh %69 : vector<8x256xf32>
    %cst_20 = arith.constant 5.000000e-01 : f32
    %71 = vector.broadcast %cst_20 : f32 to vector<8x256xf32>
    %72 = arith.mulf %71, %70 : vector<8x256xf32>
    %cst_21 = arith.constant 5.000000e-01 : f32
    %73 = vector.broadcast %cst_21 : f32 to vector<8x256xf32>
    %74 = arith.addf %72, %73 : vector<8x256xf32>
    %75 = vector.extract_strided_slice %74 {offsets = [0, 0], sizes = [8, 128], strides = [1, 1]} : vector<8x256xf32> to vector<8x128xf32>
    %76 = vector.extract_strided_slice %74 {offsets = [0, 128], sizes = [8, 128], strides = [1, 1]} : vector<8x256xf32> to vector<8x128xf32>
    %77 = vector.extract_strided_slice %63 {offsets = [0, 256], sizes = [8, 128], strides = [1, 1]} : vector<8x384xf32> to vector<8x128xf32>
    %78 = vector.extract_strided_slice %64 {offsets = [0, 256], sizes = [8, 128], strides = [1, 1]} : vector<8x384xf32> to vector<8x128xf32>
    %79 = vector.broadcast %4 : vector<1x128xf32> to vector<8x128xf32>
    %80 = arith.addf %78, %79 : vector<8x128xf32>
    %81 = arith.mulf %75, %80 : vector<8x128xf32>
    %82 = arith.addf %77, %81 : vector<8x128xf32>
    %83 = math.tanh %82 : vector<8x128xf32>
    %cst_22 = arith.constant 1.000000e+00 : f32
    %84 = vector.broadcast %cst_22 : f32 to vector<8x128xf32>
    %85 = arith.subf %84, %76 : vector<8x128xf32>
    %86 = arith.mulf %85, %83 : vector<8x128xf32>
    %87 = arith.mulf %76, %62 : vector<8x128xf32>
    %88 = arith.addf %86, %87 : vector<8x128xf32>
    %89 = vector.extract_strided_slice %9 {offsets = [24, 0], sizes = [8, 384], strides = [1, 1]} : vector<64x384xf32> to vector<8x384xf32>
    %cst_23 = arith.constant dense<0.000000e+00> : vector<8x384xf32>
    %90 = tpu.matmul %88, %1, %cst_23 {dimension_numbers = #tpu.dot_dimension_numbers<[1], [0], [0], [1], [0, 0, 1, 1], [], []>} : vector<8x128xf32>, vector<128x384xf32>, vector<8x384xf32> -> vector<8x384xf32>
    %91 = vector.extract_strided_slice %89 {offsets = [0, 0], sizes = [8, 256], strides = [1, 1]} : vector<8x384xf32> to vector<8x256xf32>
    %92 = vector.extract_strided_slice %90 {offsets = [0, 0], sizes = [8, 256], strides = [1, 1]} : vector<8x384xf32> to vector<8x256xf32>
    %93 = arith.addf %91, %92 : vector<8x256xf32>
    %cst_24 = arith.constant 5.000000e-01 : f32
    %94 = vector.broadcast %cst_24 : f32 to vector<8x256xf32>
    %95 = arith.mulf %94, %93 : vector<8x256xf32>
    %96 = math.tanh %95 : vector<8x256xf32>
    %cst_25 = arith.constant 5.000000e-01 : f32
    %97 = vector.broadcast %cst_25 : f32 to vector<8x256xf32>
    %98 = arith.mulf %97, %96 : vector<8x256xf32>
    %cst_26 = arith.constant 5.000000e-01 : f32
    %99 = vector.broadcast %cst_26 : f32 to vector<8x256xf32>
    %100 = arith.addf %98, %99 : vector<8x256xf32>
    %101 = vector.extract_strided_slice %100 {offsets = [0, 0], sizes = [8, 128], strides = [1, 1]} : vector<8x256xf32> to vector<8x128xf32>
    %102 = vector.extract_strided_slice %100 {offsets = [0, 128], sizes = [8, 128], strides = [1, 1]} : vector<8x256xf32> to vector<8x128xf32>
    %103 = vector.extract_strided_slice %89 {offsets = [0, 256], sizes = [8, 128], strides = [1, 1]} : vector<8x384xf32> to vector<8x128xf32>
    %104 = vector.extract_strided_slice %90 {offsets = [0, 256], sizes = [8, 128], strides = [1, 1]} : vector<8x384xf32> to vector<8x128xf32>
    %105 = vector.broadcast %4 : vector<1x128xf32> to vector<8x128xf32>
    %106 = arith.addf %104, %105 : vector<8x128xf32>
    %107 = arith.mulf %101, %106 : vector<8x128xf32>
    %108 = arith.addf %103, %107 : vector<8x128xf32>
    %109 = math.tanh %108 : vector<8x128xf32>
    %cst_27 = arith.constant 1.000000e+00 : f32
    %110 = vector.broadcast %cst_27 : f32 to vector<8x128xf32>
    %111 = arith.subf %110, %102 : vector<8x128xf32>
    %112 = arith.mulf %111, %109 : vector<8x128xf32>
    %113 = arith.mulf %102, %88 : vector<8x128xf32>
    %114 = arith.addf %112, %113 : vector<8x128xf32>
    %115 = vector.extract_strided_slice %9 {offsets = [32, 0], sizes = [8, 384], strides = [1, 1]} : vector<64x384xf32> to vector<8x384xf32>
    %cst_28 = arith.constant dense<0.000000e+00> : vector<8x384xf32>
    %116 = tpu.matmul %114, %1, %cst_28 {dimension_numbers = #tpu.dot_dimension_numbers<[1], [0], [0], [1], [0, 0, 1, 1], [], []>} : vector<8x128xf32>, vector<128x384xf32>, vector<8x384xf32> -> vector<8x384xf32>
    %117 = vector.extract_strided_slice %115 {offsets = [0, 0], sizes = [8, 256], strides = [1, 1]} : vector<8x384xf32> to vector<8x256xf32>
    %118 = vector.extract_strided_slice %116 {offsets = [0, 0], sizes = [8, 256], strides = [1, 1]} : vector<8x384xf32> to vector<8x256xf32>
    %119 = arith.addf %117, %118 : vector<8x256xf32>
    %cst_29 = arith.constant 5.000000e-01 : f32
    %120 = vector.broadcast %cst_29 : f32 to vector<8x256xf32>
    %121 = arith.mulf %120, %119 : vector<8x256xf32>
    %122 = math.tanh %121 : vector<8x256xf32>
    %cst_30 = arith.constant 5.000000e-01 : f32
    %123 = vector.broadcast %cst_30 : f32 to vector<8x256xf32>
    %124 = arith.mulf %123, %122 : vector<8x256xf32>
    %cst_31 = arith.constant 5.000000e-01 : f32
    %125 = vector.broadcast %cst_31 : f32 to vector<8x256xf32>
    %126 = arith.addf %124, %125 : vector<8x256xf32>
    %127 = vector.extract_strided_slice %126 {offsets = [0, 0], sizes = [8, 128], strides = [1, 1]} : vector<8x256xf32> to vector<8x128xf32>
    %128 = vector.extract_strided_slice %126 {offsets = [0, 128], sizes = [8, 128], strides = [1, 1]} : vector<8x256xf32> to vector<8x128xf32>
    %129 = vector.extract_strided_slice %115 {offsets = [0, 256], sizes = [8, 128], strides = [1, 1]} : vector<8x384xf32> to vector<8x128xf32>
    %130 = vector.extract_strided_slice %116 {offsets = [0, 256], sizes = [8, 128], strides = [1, 1]} : vector<8x384xf32> to vector<8x128xf32>
    %131 = vector.broadcast %4 : vector<1x128xf32> to vector<8x128xf32>
    %132 = arith.addf %130, %131 : vector<8x128xf32>
    %133 = arith.mulf %127, %132 : vector<8x128xf32>
    %134 = arith.addf %129, %133 : vector<8x128xf32>
    %135 = math.tanh %134 : vector<8x128xf32>
    %cst_32 = arith.constant 1.000000e+00 : f32
    %136 = vector.broadcast %cst_32 : f32 to vector<8x128xf32>
    %137 = arith.subf %136, %128 : vector<8x128xf32>
    %138 = arith.mulf %137, %135 : vector<8x128xf32>
    %139 = arith.mulf %128, %114 : vector<8x128xf32>
    %140 = arith.addf %138, %139 : vector<8x128xf32>
    %141 = vector.extract_strided_slice %9 {offsets = [40, 0], sizes = [8, 384], strides = [1, 1]} : vector<64x384xf32> to vector<8x384xf32>
    %cst_33 = arith.constant dense<0.000000e+00> : vector<8x384xf32>
    %142 = tpu.matmul %140, %1, %cst_33 {dimension_numbers = #tpu.dot_dimension_numbers<[1], [0], [0], [1], [0, 0, 1, 1], [], []>} : vector<8x128xf32>, vector<128x384xf32>, vector<8x384xf32> -> vector<8x384xf32>
    %143 = vector.extract_strided_slice %141 {offsets = [0, 0], sizes = [8, 256], strides = [1, 1]} : vector<8x384xf32> to vector<8x256xf32>
    %144 = vector.extract_strided_slice %142 {offsets = [0, 0], sizes = [8, 256], strides = [1, 1]} : vector<8x384xf32> to vector<8x256xf32>
    %145 = arith.addf %143, %144 : vector<8x256xf32>
    %cst_34 = arith.constant 5.000000e-01 : f32
    %146 = vector.broadcast %cst_34 : f32 to vector<8x256xf32>
    %147 = arith.mulf %146, %145 : vector<8x256xf32>
    %148 = math.tanh %147 : vector<8x256xf32>
    %cst_35 = arith.constant 5.000000e-01 : f32
    %149 = vector.broadcast %cst_35 : f32 to vector<8x256xf32>
    %150 = arith.mulf %149, %148 : vector<8x256xf32>
    %cst_36 = arith.constant 5.000000e-01 : f32
    %151 = vector.broadcast %cst_36 : f32 to vector<8x256xf32>
    %152 = arith.addf %150, %151 : vector<8x256xf32>
    %153 = vector.extract_strided_slice %152 {offsets = [0, 0], sizes = [8, 128], strides = [1, 1]} : vector<8x256xf32> to vector<8x128xf32>
    %154 = vector.extract_strided_slice %152 {offsets = [0, 128], sizes = [8, 128], strides = [1, 1]} : vector<8x256xf32> to vector<8x128xf32>
    %155 = vector.extract_strided_slice %141 {offsets = [0, 256], sizes = [8, 128], strides = [1, 1]} : vector<8x384xf32> to vector<8x128xf32>
    %156 = vector.extract_strided_slice %142 {offsets = [0, 256], sizes = [8, 128], strides = [1, 1]} : vector<8x384xf32> to vector<8x128xf32>
    %157 = vector.broadcast %4 : vector<1x128xf32> to vector<8x128xf32>
    %158 = arith.addf %156, %157 : vector<8x128xf32>
    %159 = arith.mulf %153, %158 : vector<8x128xf32>
    %160 = arith.addf %155, %159 : vector<8x128xf32>
    %161 = math.tanh %160 : vector<8x128xf32>
    %cst_37 = arith.constant 1.000000e+00 : f32
    %162 = vector.broadcast %cst_37 : f32 to vector<8x128xf32>
    %163 = arith.subf %162, %154 : vector<8x128xf32>
    %164 = arith.mulf %163, %161 : vector<8x128xf32>
    %165 = arith.mulf %154, %140 : vector<8x128xf32>
    %166 = arith.addf %164, %165 : vector<8x128xf32>
    %167 = vector.extract_strided_slice %9 {offsets = [48, 0], sizes = [8, 384], strides = [1, 1]} : vector<64x384xf32> to vector<8x384xf32>
    %cst_38 = arith.constant dense<0.000000e+00> : vector<8x384xf32>
    %168 = tpu.matmul %166, %1, %cst_38 {dimension_numbers = #tpu.dot_dimension_numbers<[1], [0], [0], [1], [0, 0, 1, 1], [], []>} : vector<8x128xf32>, vector<128x384xf32>, vector<8x384xf32> -> vector<8x384xf32>
    %169 = vector.extract_strided_slice %167 {offsets = [0, 0], sizes = [8, 256], strides = [1, 1]} : vector<8x384xf32> to vector<8x256xf32>
    %170 = vector.extract_strided_slice %168 {offsets = [0, 0], sizes = [8, 256], strides = [1, 1]} : vector<8x384xf32> to vector<8x256xf32>
    %171 = arith.addf %169, %170 : vector<8x256xf32>
    %cst_39 = arith.constant 5.000000e-01 : f32
    %172 = vector.broadcast %cst_39 : f32 to vector<8x256xf32>
    %173 = arith.mulf %172, %171 : vector<8x256xf32>
    %174 = math.tanh %173 : vector<8x256xf32>
    %cst_40 = arith.constant 5.000000e-01 : f32
    %175 = vector.broadcast %cst_40 : f32 to vector<8x256xf32>
    %176 = arith.mulf %175, %174 : vector<8x256xf32>
    %cst_41 = arith.constant 5.000000e-01 : f32
    %177 = vector.broadcast %cst_41 : f32 to vector<8x256xf32>
    %178 = arith.addf %176, %177 : vector<8x256xf32>
    %179 = vector.extract_strided_slice %178 {offsets = [0, 0], sizes = [8, 128], strides = [1, 1]} : vector<8x256xf32> to vector<8x128xf32>
    %180 = vector.extract_strided_slice %178 {offsets = [0, 128], sizes = [8, 128], strides = [1, 1]} : vector<8x256xf32> to vector<8x128xf32>
    %181 = vector.extract_strided_slice %167 {offsets = [0, 256], sizes = [8, 128], strides = [1, 1]} : vector<8x384xf32> to vector<8x128xf32>
    %182 = vector.extract_strided_slice %168 {offsets = [0, 256], sizes = [8, 128], strides = [1, 1]} : vector<8x384xf32> to vector<8x128xf32>
    %183 = vector.broadcast %4 : vector<1x128xf32> to vector<8x128xf32>
    %184 = arith.addf %182, %183 : vector<8x128xf32>
    %185 = arith.mulf %179, %184 : vector<8x128xf32>
    %186 = arith.addf %181, %185 : vector<8x128xf32>
    %187 = math.tanh %186 : vector<8x128xf32>
    %cst_42 = arith.constant 1.000000e+00 : f32
    %188 = vector.broadcast %cst_42 : f32 to vector<8x128xf32>
    %189 = arith.subf %188, %180 : vector<8x128xf32>
    %190 = arith.mulf %189, %187 : vector<8x128xf32>
    %191 = arith.mulf %180, %166 : vector<8x128xf32>
    %192 = arith.addf %190, %191 : vector<8x128xf32>
    %193 = vector.extract_strided_slice %9 {offsets = [56, 0], sizes = [8, 384], strides = [1, 1]} : vector<64x384xf32> to vector<8x384xf32>
    %cst_43 = arith.constant dense<0.000000e+00> : vector<8x384xf32>
    %194 = tpu.matmul %192, %1, %cst_43 {dimension_numbers = #tpu.dot_dimension_numbers<[1], [0], [0], [1], [0, 0, 1, 1], [], []>} : vector<8x128xf32>, vector<128x384xf32>, vector<8x384xf32> -> vector<8x384xf32>
    %195 = vector.extract_strided_slice %193 {offsets = [0, 0], sizes = [8, 256], strides = [1, 1]} : vector<8x384xf32> to vector<8x256xf32>
    %196 = vector.extract_strided_slice %194 {offsets = [0, 0], sizes = [8, 256], strides = [1, 1]} : vector<8x384xf32> to vector<8x256xf32>
    %197 = arith.addf %195, %196 : vector<8x256xf32>
    %cst_44 = arith.constant 5.000000e-01 : f32
    %198 = vector.broadcast %cst_44 : f32 to vector<8x256xf32>
    %199 = arith.mulf %198, %197 : vector<8x256xf32>
    %200 = math.tanh %199 : vector<8x256xf32>
    %cst_45 = arith.constant 5.000000e-01 : f32
    %201 = vector.broadcast %cst_45 : f32 to vector<8x256xf32>
    %202 = arith.mulf %201, %200 : vector<8x256xf32>
    %cst_46 = arith.constant 5.000000e-01 : f32
    %203 = vector.broadcast %cst_46 : f32 to vector<8x256xf32>
    %204 = arith.addf %202, %203 : vector<8x256xf32>
    %205 = vector.extract_strided_slice %204 {offsets = [0, 0], sizes = [8, 128], strides = [1, 1]} : vector<8x256xf32> to vector<8x128xf32>
    %206 = vector.extract_strided_slice %204 {offsets = [0, 128], sizes = [8, 128], strides = [1, 1]} : vector<8x256xf32> to vector<8x128xf32>
    %207 = vector.extract_strided_slice %193 {offsets = [0, 256], sizes = [8, 128], strides = [1, 1]} : vector<8x384xf32> to vector<8x128xf32>
    %208 = vector.extract_strided_slice %194 {offsets = [0, 256], sizes = [8, 128], strides = [1, 1]} : vector<8x384xf32> to vector<8x128xf32>
    %209 = vector.broadcast %4 : vector<1x128xf32> to vector<8x128xf32>
    %210 = arith.addf %208, %209 : vector<8x128xf32>
    %211 = arith.mulf %205, %210 : vector<8x128xf32>
    %212 = arith.addf %207, %211 : vector<8x128xf32>
    %213 = math.tanh %212 : vector<8x128xf32>
    %cst_47 = arith.constant 1.000000e+00 : f32
    %214 = vector.broadcast %cst_47 : f32 to vector<8x128xf32>
    %215 = arith.subf %214, %206 : vector<8x128xf32>
    %216 = arith.mulf %215, %213 : vector<8x128xf32>
    %217 = arith.mulf %206, %192 : vector<8x128xf32>
    %218 = arith.addf %216, %217 : vector<8x128xf32>
    %cst_48 = arith.constant dense<0.000000e+00> : vector<8x128xf32>
    %219 = tpu.matmul %218, %2, %cst_48 {dimension_numbers = #tpu.dot_dimension_numbers<[1], [0], [0], [1], [0, 0, 1, 1], [], []>} : vector<8x128xf32>, vector<128x128xf32>, vector<8x128xf32> -> vector<8x128xf32>
    %220 = vector.broadcast %5 : vector<1x128xf32> to vector<8x128xf32>
    %221 = arith.addf %219, %220 : vector<8x128xf32>
    %cst_49 = arith.constant 0.000000e+00 : f32
    %222 = vector.broadcast %cst_49 : f32 to vector<8x128xf32>
    %223 = arith.maximumf %221, %222 : vector<8x128xf32>
    %c0_50 = arith.constant 0 : index
    %c0_51 = arith.constant 0 : index
    %224 = vector.load %arg2[%c0_50, %c0_51] : memref<8x128xf32, #tpu.memory_space<vmem>>, vector<8x128xf32>
    tpu.vector_store %arg2[%c0_50, %c0_51], %223 {strides = array<i32>} : memref<8x128xf32, #tpu.memory_space<vmem>>, vector<8x128xf32>,
    return
  }
}

</mosaic_0001>

<bundles_post_ra>
// kernel: tpu_custom_call.1
= control target key start
LH: loop header
LB: loop body
LE: loop exit
PB: predicated region body
PF: predicated region fallthrough
CT: control target
= control target key end

     0   :  { %7 = vsyncpa [#allocation3], 0  ;;  %s3341_s0 = inlined_call_operand.vmem [shape: f32[64,16], index: 0, kind: input, shape index: {}]   ;;  %s3342_s1 = inlined_call_operand.hbm [shape: f32[296,384], index: 1, kind: input, shape index: {}]   ;;  %s3343_s2 = inlined_call_operand.hbm [shape: f32[8,128], index: 2, kind: output, shape index: {}]  }
   0x1   :  { %8 = vsyncpa [#allocation4], 0  ;;  %s2851_s9 = smov [#allocation2]   ;;  %s2803_s13 = scalar_lea.hbm %s3342_s1, 14208 }
   0x2   :  { %s16_s10 = sshll.u32 %s2851_s9, 4  ;;  %p2804_p0 = scmp.ne.s32.totalorder %s3342_s1, %s2803_s13  ;;  %s17_s10 = int_to_ptr.vmem [resolvable:$true] %s16_s10 }
   0x3   :  { %p2807_p1 = scmp.lt.u32.totalorder %s2803_s13, %s3342_s1 }
   0x5   :  { %p2809_p2 = pnand %p2807_p1, %p2804_p0 }
   0x7   :  { %2812 = shalt.err (!%p2809_p2)
}
   0x8   :  { %s2813_s18 = scalar_lea.vmem %s17_s10, 14208  ;;  %p2818_p4 = scmp.lt.s32.totalorder %s17_s10, %s17_s10 }
   0x9   :  { %p2814_p3 = scmp.ne.s32.totalorder %s17_s10, %s2813_s18  ;;  %p2819_p5 = scmp.lt.s32.totalorder %s2813_s18, %s2813_s18 }
   0xb   :  { %p2820_p6 = por %p2819_p5, %p2818_p4 }
   0xd   :  { %p2821_p7 = pnand %p2820_p6, %p2814_p3 }
   0xf   :  { %2824 = shalt.err (!%p2821_p7)
}
  0x10   :  { %s2852_s19 = smov 384   ;;  %s2853_s20 = smov 24  }
  0x11   :  { %22 = dma.hbm_to_vmem [thread:$0]  %s3342_s1, 14208, %s17_s10, [#allocation3], %s2852_s19, %s2852_s19, %s2853_s20  }
  0x12   :  { %2847 = dma.done.wait [#allocation3], 14208  }
  0x13   :  { %2848 = vsyncadd [#allocation3], 4294953088  ;;  %v2854_v0 = vmov 0.0   ;;  %v27_v1 = vld [vmem:[#allocation2 + $0x8] sm:$0xff]  ;;  %v30_v2 = vld [vmem:[#allocation2 + $0x20] sm:$0xff]  ;;  %vm124_vm0 = vcmask 130048  }
  0x14   :  { %213 = vmatprep.mubr.f32.mxu0 %v2854_v0  ;;  %v26_v3 = vld [vmem:[#allocation2] sm:$0xff]  ;;  %v2236_v4 = vpack.c.bf16 %v30_v2, %v27_v1  ;;  %v29_v5 = vld [vmem:[#allocation2 + $0x18] sm:$0xff]  ;;  %v36_v9 = vld [vmem:[#allocation2 + $0x50] sm:$0xff]  ;;  %v2855_v40 = vmov 0.0|0.0   ;;  %vm2856_vm1 = vmmov 0  }
  0x15   :  { %v100_v6 = vld [vmem:[%s3341_s0] sm:$0xff]  ;;  %v33_v7 = vld [vmem:[#allocation2 + $0x38] sm:$0xff]  ;;  %v2238_v8 = vpack.c.bf16 %v29_v5, %v26_v3  ;;  %v32_v10 = vld [vmem:[#allocation2 + $0x30] sm:$0xff] }
  0x16   :  { %v35_v11 = vld [vmem:[#allocation2 + $0x48] sm:$0xff]  ;;  %1909 = vmatprep.mubr.msk.f32.mxu1 %vm124_vm0, %v100_v6  ;;  %2237 = vmatprep.subr.bf16.mxu0 %v2236_v4  ;;  %v2890_v12 = vpack.c.bf16 %v36_v9, %v33_v7  ;;  %v42_v14 = vld [vmem:[#allocation2 + $0x80] sm:$0xff]  ;;  %v41_v18 = vld [vmem:[#allocation2 + $0x78] sm:$0xff] }
  0x17   :  { %v39_v13 = vld [vmem:[#allocation2 + $0x68] sm:$0xff]  ;;  %2239 = vmatpush1.bf16.msra.mxu0 %v2238_v8  ;;  %v2892_v15 = vpack.c.bf16 %v35_v11, %v32_v10  ;;  %v38_v17 = vld [vmem:[#allocation2 + $0x60] sm:$0xff]  ;;  %v45_v19 = vld [vmem:[#allocation2 + $0x98] sm:$0xff] }
  0x18   :  { %2245 = vmatprep.subr.bf16.mxu0 %v2890_v12  ;;  %v2895_v16 = vpack.c.bf16 %v42_v14, %v39_v13  ;;  %v48_v20 = vld [vmem:[#allocation2 + $0xb0] sm:$0xff]  ;;  %v31_v22 = vld [vmem:[#allocation2 + $0x28] sm:$0xff]  ;;  %v2903_v24 = vpack.c.bf16 %v41_v18, %v38_v17  ;;  %v54_v30 = vld [vmem:[#allocation2 + $0xe0] sm:$0xff] }
  0x19   :  { %v28_v21 = vld [vmem:[#allocation2 + $0x10] sm:$0xff]  ;;  %v101_v23 = vld [vmem:[%s3341_s0 + $0x8] sm:$0xff]  ;;  %v2906_v26 = vpack.c.bf16 %v48_v20, %v45_v19  ;;  %v34_v31 = vld [vmem:[#allocation2 + $0x40] sm:$0xff] }
  0x1a   :  { %1726 = vmatmul.mubr.msk.f32.vlgmr.msra.gmra.mrb[0].mxu0 %vm124_vm0, %v100_v6  ;;  %v2240_v25 = vpack.c.bf16 %v31_v22, %v28_v21  ;;  %v44_v27 = vld [vmem:[#allocation2 + $0x90] sm:$0xff]  ;;  %v47_v28 = vld [vmem:[#allocation2 + $0xa8] sm:$0xff]  ;;  %v37_v32 = vld [vmem:[#allocation2 + $0x58] sm:$0xff] }
  0x1b   :  { %2247 = vmatpush1.bf16.msra.mxu0 %v2892_v15  ;;  %219 = vmatprep.mubr.f32.mxu0 %v2854_v0  ;;  %v51_v29 = vld [vmem:[#allocation2 + $0xc8] sm:$0xff]  ;;  %v2909_v33 = vpack.c.bf16 %v37_v32, %v34_v31  ;;  %v102_v34 = vld [vmem:[%s3341_s0 + $0x10] sm:$0xff]  ;;  %v2916_v35 = vpack.c.bf16 %v47_v28, %v44_v27  ;;  %v50_v38 = vld [vmem:[#allocation2 + $0xc0] sm:$0xff] }
  0x1c   :  { %2249 = vmatprep.subr.bf16.mxu0 %v2895_v16  ;;  %2241 = vmatprep.subr.bf16.mxu1 %v2240_v25  ;;  %v40_v36 = vld [vmem:[#allocation2 + $0x70] sm:$0xff]  ;;  %v2919_v37 = vpack.c.bf16 %v54_v30, %v51_v29  ;;  %v53_v39 = vld [vmem:[#allocation2 + $0xd8] sm:$0xff]  ;;  %v43_v41 = vld [vmem:[#allocation2 + $0x88] sm:$0xff] }
  0x1d   :  { %2243 = vmatpush3.bf16.msra.mxu1 %v2240_v25  ;;  %v57_v42 = vld [vmem:[#allocation2 + $0xf8] sm:$0xff]  ;;  %v60_v43 = vld [vmem:[#allocation2 + $0x110] sm:$0xff]  ;;  %v2925_v44 = vpack.c.bf16 %v43_v41, %v40_v36  ;;  %v2932_v46 = vpack.c.bf16 %v53_v39, %v50_v38  ;;  %v46_v47 = vld [vmem:[#allocation2 + $0xa0] sm:$0xff] }
  0x1e   :  { %1727 = vmatmul.mubr.msk.f32.gmra.mrb[2].mxu0 %vm124_vm0, %v101_v23  ;;  %2276 = vmatprep.subr.bf16.mxu1 %v2855_v40  ;;  %v103_v45 = vld [vmem:[%s3341_s0 + $0x18] sm:$0xff]  ;;  %v2935_v49 = vpack.c.bf16 %v60_v43, %v57_v42  ;;  %v56_v50 = vld [vmem:[#allocation2 + $0xf0] sm:$0xff]  ;;  %v59_v51 = vld [vmem:[#allocation2 + $0x108] sm:$0xff] }
  0x1f   :  { %2251 = vmatpush1.bf16.msra.mxu0 %v2903_v24  ;;  %225 = vmatprep.mubr.f32.mxu0 %v2854_v0  ;;  %v49_v48 = vld [vmem:[#allocation2 + $0xb8] sm:$0xff]  ;;  %v63_v52 = vld [vmem:[#allocation2 + $0x128] sm:$0xff]  ;;  %v66_v53 = vld [vmem:[#allocation2 + $0x140] sm:$0xff]  ;;  %v2948_v56 = vpack.c.bf16 %v59_v51, %v56_v50 }
  0x20   :  { %2253 = vmatprep.subr.bf16.mxu0 %v2906_v26  ;;  %1910 = vmatmul.mubr.msk.f32.vlgmr.msra.gmra.mrb[0].mxu1 %vm124_vm0, %v101_v23  ;;  %v2941_v54 = vpack.c.bf16 %v49_v48, %v46_v47  ;;  %v104_v55 = vld [vmem:[%s3341_s0 + $0x20] sm:$0xff]  ;;  %v52_v57 = vld [vmem:[#allocation2 + $0xd0] sm:$0xff]  ;;  %v55_v58 = vld [vmem:[#allocation2 + $0xe8] sm:$0xff]  ;;  %v2951_v59 = vpack.c.bf16 %v66_v53, %v63_v52 }
  0x21   :  { %2278 = vmatpush3.bf16.msra.mxu1 %v2909_v33  ;;  %1912 = vmatprep.mubr.msk.f32.mxu1 %vm124_vm0, %v102_v34  ;;  %v62_v60 = vld [vmem:[#allocation2 + $0x120] sm:$0xff]  ;;  %v65_v61 = vld [vmem:[#allocation2 + $0x138] sm:$0xff]  ;;  %v72_v63 = vld [vmem:[#allocation2 + $0x170] sm:$0xff]  ;;  %v2957_v1 = vpack.c.bf16 %v55_v58, %v52_v57 }
  0x22   :  { %1728 = vmatmul.mubr.msk.f32.gmra.mrb[4].mxu0 %vm124_vm0, %v102_v34  ;;  %2279 = vmatprep.subr.bf16.mxu1 %v2855_v40  ;;  %v69_v62 = vld [vmem:[#allocation2 + $0x158] sm:$0xff]  ;;  %v105_v2 = vld [vmem:[%s3341_s0 + $0x28] sm:$0xff]  ;;  %v2964_v3 = vpack.c.bf16 %v65_v61, %v62_v60  ;;  %v58_v4 = vld [vmem:[#allocation2 + $0x100] sm:$0xff]  ;;  %v109_v34 = vlaneseq }
  0x23   :  { %2255 = vmatpush1.bf16.msra.mxu0 %v2916_v35  ;;  %231 = vmatprep.mubr.f32.mxu0 %v2854_v0  ;;  %v61_v5 = vld [vmem:[#allocation2 + $0x118] sm:$0xff]  ;;  %v2967_v6 = vpack.c.bf16 %v72_v63, %v69_v62  ;;  %v68_v7 = vld [vmem:[#allocation2 + $0x150] sm:$0xff]  ;;  %v71_v8 = vld [vmem:[#allocation2 + $0x168] sm:$0xff] }
  0x24   :  { %2257 = vmatprep.subr.bf16.mxu0 %v2919_v37  ;;  %1913 = vmatmul.mubr.msk.f32.gmra.mrb[2].mxu1 %vm124_vm0, %v103_v45  ;;  %v75_v9 = vld [vmem:[#allocation2 + $0x188] sm:$0xff]  ;;  %v78_v10 = vld [vmem:[#allocation2 + $0x1a0] sm:$0xff]  ;;  %v2973_v11 = vpack.c.bf16 %v61_v5, %v58_v4  ;;  %v106_v13 = vld [vmem:[%s3341_s0 + $0x30] sm:$0xff]  ;;  %v2980_v14 = vpack.c.bf16 %v71_v8, %v68_v7  ;;  %v110_v36 = vshrl.u32 %v109_v34, 7 }
  0x25   :  { %2281 = vmatpush3.bf16.msra.mxu1 %v2925_v44  ;;  %1915 = vmatprep.mubr.msk.f32.mxu1 %vm124_vm0, %v104_v55  ;;  %v64_v17 = vld [vmem:[#allocation2 + $0x130] sm:$0xff]  ;;  %v67_v18 = vld [vmem:[#allocation2 + $0x148] sm:$0xff]  ;;  %v2983_v19 = vpack.c.bf16 %v78_v10, %v75_v9  ;;  %v74_v20 = vld [vmem:[#allocation2 + $0x180] sm:$0xff] }
  0x26   :  { %1729 = vmatmul.mubr.msk.f32.gmra.mrb[6].mxu0 %vm124_vm0, %v103_v45  ;;  %2282 = vmatprep.subr.bf16.mxu1 %v2855_v40  ;;  %v77_v21 = vld [vmem:[#allocation2 + $0x198] sm:$0xff]  ;;  %v2989_v22 = vpack.c.bf16 %v67_v18, %v64_v17  ;;  %v70_v27 = vld [vmem:[#allocation2 + $0x160] sm:$0xff]  ;;  %v76_v30 = vld [vmem:[#allocation2 + $0x190] sm:$0xff]  ;;  %v119_v38 = vsub.s32 2, %v110_v36  ;;  %v111_v57 = vsub.s32 0, %v110_v36  ;;  %v115_v60 = vsub.s32 1, %v110_v36 }
  0x27   :  { %2259 = vmatpush1.bf16.msra.mxu0 %v2932_v46  ;;  %237 = vmatprep.mubr.f32.mxu0 %v2854_v0  ;;  %v107_v23 = vld [vmem:[%s3341_s0 + $0x38] sm:$0xff]  ;;  %v2996_v25 = vpack.c.bf16 %v77_v21, %v74_v20  ;;  %v79_v31 = vld [vmem:[#allocation2 + $0x1a8] sm:$0xff]  ;;  %s2857_s0 = smov [#allocation5]  }
  0x28   :  { %2261 = vmatprep.subr.bf16.mxu0 %v2935_v49  ;;  %1916 = vmatmul.mubr.msk.f32.gmra.mrb[4].mxu1 %vm124_vm0, %v105_v2  ;;  %v73_v28 = vld [vmem:[#allocation2 + $0x178] sm:$0xff]  ;;  %v3014_v32 = vpack.c.bf16 %v79_v31, %v76_v30  ;;  %s1717_s10 = sshll.u32 %s2857_s0, 4  ;;  %s1718_s10 = int_to_ptr.vmem [resolvable:$true] %s1717_s10 }
  0x29   :  { %2284 = vmatpush3.bf16.msra.mxu1 %v2941_v54  ;;  %1918 = vmatprep.mubr.msk.f32.mxu1 %vm124_vm0, %v106_v13  ;;  %v3003_v29 = vpack.c.bf16 %v73_v28, %v70_v27  ;;  %v97_v39 = vld [vmem:[#allocation2 + $0x330] ss:$8 sm:$0x7]  ;;  %s2825_s11 = scalar_lea.vmem %s1718_s10, 128  ;;  %p2830_p9 = scmp.lt.s32.totalorder %s1718_s10, %s1718_s10 }
  0x2a   :  { %1730 = vmatmul.mubr.msk.f32.gmra.mrb[8].mxu0 %vm124_vm0, %v104_v55  ;;  %2285 = vmatprep.subr.bf16.mxu1 %v2855_v40  ;;  %v120_v41 = vrot.slane %v97_v39, %v119_v38  ;;  %v3065_v61 = vrot.slane %v97_v39, %v111_v57  ;;  %v3069_v5 = vrot.slane %v97_v39, %v115_v60  ;;  %v3075_v21 = vld [vmem:[#allocation2 + $0x358] ss:$0 sm:$0xff]  ;;  %p2826_p8 = scmp.ne.s32.totalorder %s1718_s10, %s2825_s11  ;;  %p2831_p10 = scmp.lt.s32.totalorder %s2825_s11, %s2825_s11 }
  0x2b   :  { %2263 = vmatpush1.bf16.msra.mxu0 %v2948_v56  ;;  %243 = vmatprep.mubr.f32.mxu0 %v2854_v0 }
  0x2c   :  { %2265 = vmatprep.subr.bf16.mxu0 %v2951_v59  ;;  %1919 = vmatmul.mubr.msk.f32.gmra.mrb[6].mxu1 %vm124_vm0, %v107_v23  ;;  %p2832_p11 = por %p2831_p10, %p2830_p9 }
  0x2d   :  { %2287 = vmatpush3.bf16.msra.mxu1 %v2957_v1  ;;  %1953 = vmatprep.mubr.msk.f32.mxu1 %vm2856_vm1, %v2854_v0 }
  0x2e   :  { %1731 = vmatmul.mubr.msk.f32.gmra.mrb[10].mxu0 %vm124_vm0, %v105_v2  ;;  %2288 = vmatprep.subr.bf16.mxu1 %v2855_v40  ;;  %p2833_p12 = pnand %p2832_p11, %p2826_p8 }
  0x2f   :  { %2267 = vmatpush1.bf16.msra.mxu0 %v2964_v3  ;;  %249 = vmatprep.mubr.f32.mxu0 %v2854_v0 }
  0x30   :  { %2269 = vmatprep.subr.bf16.mxu0 %v2967_v6 }
  0x31   :  { %2290 = vmatpush3.bf16.msra.mxu1 %v2973_v11 }
  0x32   :  { %1732 = vmatmul.mubr.msk.f32.gmra.mrb[12].mxu0 %vm124_vm0, %v106_v13  ;;  %2291 = vmatprep.subr.bf16.mxu1 %v2855_v40 }
  0x33   :  { %2271 = vmatpush1.bf16.msra.mxu0 %v2980_v14  ;;  %255 = vmatprep.mubr.f32.mxu0 %v2854_v0 }
  0x34   :  { %2273 = vmatprep.subr.bf16.mxu0 %v2983_v19 }
  0x35   :  { %2293 = vmatpush3.bf16.msra.mxu1 %v2989_v22 }
  0x36   :  { %1733 = vmatmul.mubr.msk.f32.gmra.mrb[14].mxu0 %vm124_vm0, %v107_v23  ;;  %2294 = vmatprep.subr.bf16.mxu1 %v2855_v40 }
  0x37   :  { %2275 = vmatpush1.bf16.msra.mxu0 %v2996_v25  ;;  %431 = vmatprep.mubr.f32.mxu0 %v2854_v0 }
  0x38   :  { %2301 = vmatprep.subr.bf16.mxu0 %v2890_v12 }
  0x39   :  { %2296 = vmatpush3.bf16.msra.mxu1 %v3003_v29 }
  0x3a   :  { %432 = vmatmul.mubr.f32.vlgmr.msra.gmra.mrb[0].mxu0 %v2854_v0  ;;  %2297 = vmatprep.subr.bf16.mxu1 %v2855_v40 }
  0x3b   :  { %2303 = vmatpush1.bf16.msra.mxu0 %v2892_v15  ;;  %590 = vmatprep.mubr.f32.mxu0 %v2854_v0 }
  0x3c   :  { %2305 = vmatprep.subr.bf16.mxu0 %v2895_v16 }
  0x3d   :  { %2299 = vmatpush3.bf16.msra.mxu1 %v3014_v32 }
  0x3e   :  { %2332 = vmatprep.subr.bf16.mxu1 %v2855_v40 }
  0x3f   :  { %2307 = vmatpush1.bf16.msra.mxu0 %v2903_v24 }
  0x40   :  { %2309 = vmatprep.subr.bf16.mxu0 %v2906_v26  ;;  %1954 = vmatmul.mubr.f32.vlgmr.msra.gmra.mrb[8].mxu1 %v2854_v0 }
  0x41   :  { %2334 = vmatpush3.bf16.msra.mxu1 %v2909_v33  ;;  %1988 = vmatprep.mubr.msk.f32.mxu1 %vm2856_vm1, %v2854_v0 }
  0x42   :  { %2335 = vmatprep.subr.bf16.mxu1 %v2855_v40 }
  0x43   :  { %2311 = vmatpush1.bf16.msra.mxu0 %v2916_v35 }
  0x44   :  { %2313 = vmatprep.subr.bf16.mxu0 %v2919_v37 }
  0x45   :  { %2337 = vmatpush3.bf16.msra.mxu1 %v2925_v44 }
  0x46   :  { %2338 = vmatprep.subr.bf16.mxu1 %v2855_v40 }
  0x47   :  { %2315 = vmatpush1.bf16.msra.mxu0 %v2932_v46 }
  0x48   :  { %2317 = vmatprep.subr.bf16.mxu0 %v2935_v49 }
  0x49   :  { %2340 = vmatpush3.bf16.msra.mxu1 %v2941_v54 }
  0x4a   :  { %2341 = vmatprep.subr.bf16.mxu1 %v2855_v40 }
  0x4b   :  { %2319 = vmatpush1.bf16.msra.mxu0 %v2948_v56 }
  0x4c   :  { %2321 = vmatprep.subr.bf16.mxu0 %v2951_v59 }
  0x4d   :  { %2343 = vmatpush3.bf16.msra.mxu1 %v2957_v1 }
  0x4e   :  { %2344 = vmatprep.subr.bf16.mxu1 %v2855_v40 }
  0x4f   :  { %2323 = vmatpush1.bf16.msra.mxu0 %v2964_v3 }
  0x50   :  { %2325 = vmatprep.subr.bf16.mxu0 %v2967_v6 }
  0x51   :  { %2346 = vmatpush3.bf16.msra.mxu1 %v2973_v11 }
  0x52   :  { %2347 = vmatprep.subr.bf16.mxu1 %v2855_v40 }
  0x53   :  { %2327 = vmatpush1.bf16.msra.mxu0 %v2980_v14 }
  0x54   :  { %2329 = vmatprep.subr.bf16.mxu0 %v2983_v19 }
  0x55   :  { %2349 = vmatpush3.bf16.msra.mxu1 %v2989_v22 }
  0x56   :  { %2350 = vmatprep.subr.bf16.mxu1 %v2855_v40 }
  0x57   :  { %2331 = vmatpush1.bf16.msra.mxu0 %v2996_v25 }
  0x58   :  { %2357 = vmatprep.subr.bf16.mxu0 %v2890_v12 }
  0x59   :  { %2352 = vmatpush3.bf16.msra.mxu1 %v3003_v29 }
  0x5a   :  { %2353 = vmatprep.subr.bf16.mxu1 %v2855_v40 }
  0x5d   :  { %2355 = vmatpush3.bf16.msra.mxu1 %v3014_v32 }
  0x5e   :  { %2388 = vmatprep.subr.bf16.mxu1 %v2855_v40 }
  0xf3   :  { %v1911_v42 = vpop.f32.mrb[0].mxu1 }
  0xf4   :  { %v3055_v43 = vadd.f32 %v1911_v42, %v120_v41  ;;  %v328_v45 = vpop.f32.mrb[1].mxu1 }
  0xf5   :  { %v329_v31 = vadd.f32 %v328_v45, %v120_v41 }
  0xf7   :  { %v1914_v47 = vpop.f32.mrb[2].mxu1 }
  0xf8   :  { %v3057_v48 = vadd.f32 %v1914_v47, %v120_v41  ;;  %v338_v50 = vpop.f32.mrb[3].mxu1 }
  0xf9   :  { %v3059_v51 = vadd.f32 %v338_v50, %v120_v41 }
  0xfb   :  { %v1917_v52 = vpop.f32.mrb[4].mxu1 }
  0xfc   :  { %v3061_v53 = vadd.f32 %v1917_v52, %v120_v41  ;;  %v348_v55 = vpop.f32.mrb[5].mxu1 }
  0xfd   :  { %v3063_v58 = vadd.f32 %v348_v55, %v120_v41 }
  0xff   :  { %v1920_v62 = vpop.f32.mrb[6].mxu1 }
 0x100   :  { %v3067_v63 = vadd.f32 %v1920_v62, %v120_v41  ;;  %v358_v2 = vpop.f32.mrb[7].mxu1 }
 0x101   :  { %v3071_v7 = vadd.f32 %v358_v2, %v120_v41 }
 0x10d   :  { %v433_v4 = vpop.f32.mrb[0].mxu0 }
 0x10e   :  { %v2716_v8 = vadd.f32 %v433_v4, %v3065_v61  ;;  %v435_v9 = vpop.f32.mrb[1].mxu0 }
 0x10f   :  { %v2717_v13 = vadd.f32 %v435_v9, %v3069_v5 }
 0x110   :  { %v510_v10 = vmul.f32 0.5, %v2716_v8 }
 0x111   :  { %v511_v18 = vmul.f32 0.5, %v2717_v13 }
 0x112   :  { %2755 = vtanh.f32 %v510_v10 }
 0x113   :  { %v504_v17 = vpop.f32.mrb[8].mxu1  ;;  %2757 = vtanh.f32 %v511_v18 }
 0x114   :  { %v1955_v20 = vpop.f32.mrb[9].mxu1  ;;  %v518_v28 = vadd.f32 %v504_v17, %v3075_v21 }
 0x11c   :  { %v2756_v23 = vpop.eup %2755 }
 0x11d   :  { %v514_v27 = vmul.f32 0.5, %v2756_v23  ;;  %v2758_v36 = vpop.eup %2757 }
 0x11e   :  { %v515_v39 = vmul.f32 0.5, %v2758_v36 }
 0x11f   :  { %v516_v30 = vadd.f32 0.5, %v514_v27 }
 0x120   :  { %v517_v42 = vadd.f32 0.5, %v515_v39 }
 0x121   :  { %v519_v34 = vmul.f32 %v518_v28, %v516_v30 }
 0x122   :  { %v522_v47 = vsub.f32 1.0, %v517_v42  ;;  %v524_v52 = vmul.f32 0.0, %v517_v42 }
 0x123   :  { %v520_v38 = vadd.f32 %v519_v34, %v329_v31 }
 0x125   :  { %2759 = vtanh.f32 %v520_v38 }
 0x12f   :  { %v2760_v50 = vpop.eup %2759 }
 0x130   :  { %v523_v55 = vmul.f32 %v2760_v50, %v522_v47 }
 0x132   :  { %v525_v57 = vadd.f32 %v524_v52, %v523_v55 }
 0x134   :  { %591 = vmatmul.mubr.f32.vlgmr.msra.gmra.mrb[2].mxu0 %v525_v57  ;;  %1989 = vmatmul.mubr.f32.vlgmr.msra.gmra.mrb[10].mxu1 %v525_v57 }
 0x135   :  { %2359 = vmatpush1.bf16.msra.mxu0 %v2892_v15  ;;  %2390 = vmatpush3.bf16.msra.mxu1 %v2909_v33 }
 0x136   :  { %2361 = vmatprep.subr.bf16.mxu0 %v2895_v16  ;;  %2391 = vmatprep.subr.bf16.mxu1 %v2855_v40 }
 0x137   :  { %749 = vmatprep.mubr.f32.mxu0 %v2854_v0  ;;  %2023 = vmatprep.mubr.msk.f32.mxu1 %vm2856_vm1, %v2854_v0 }
 0x139   :  { %2363 = vmatpush1.bf16.msra.mxu0 %v2903_v24  ;;  %2393 = vmatpush3.bf16.msra.mxu1 %v2925_v44 }
 0x13a   :  { %2365 = vmatprep.subr.bf16.mxu0 %v2906_v26  ;;  %2394 = vmatprep.subr.bf16.mxu1 %v2855_v40 }
 0x13d   :  { %2367 = vmatpush1.bf16.msra.mxu0 %v2916_v35  ;;  %2396 = vmatpush3.bf16.msra.mxu1 %v2941_v54 }
 0x13e   :  { %2369 = vmatprep.subr.bf16.mxu0 %v2919_v37  ;;  %2397 = vmatprep.subr.bf16.mxu1 %v2855_v40 }
 0x141   :  { %2371 = vmatpush1.bf16.msra.mxu0 %v2932_v46  ;;  %2399 = vmatpush3.bf16.msra.mxu1 %v2957_v1 }
 0x142   :  { %2373 = vmatprep.subr.bf16.mxu0 %v2935_v49  ;;  %2400 = vmatprep.subr.bf16.mxu1 %v2855_v40 }
 0x145   :  { %2375 = vmatpush1.bf16.msra.mxu0 %v2948_v56  ;;  %2402 = vmatpush3.bf16.msra.mxu1 %v2973_v11 }
 0x146   :  { %2377 = vmatprep.subr.bf16.mxu0 %v2951_v59  ;;  %2403 = vmatprep.subr.bf16.mxu1 %v2855_v40 }
 0x149   :  { %2379 = vmatpush1.bf16.msra.mxu0 %v2964_v3  ;;  %2405 = vmatpush3.bf16.msra.mxu1 %v2989_v22 }
 0x14a   :  { %2381 = vmatprep.subr.bf16.mxu0 %v2967_v6  ;;  %2406 = vmatprep.subr.bf16.mxu1 %v2855_v40 }
 0x14d   :  { %2383 = vmatpush1.bf16.msra.mxu0 %v2980_v14  ;;  %2408 = vmatpush3.bf16.msra.mxu1 %v3003_v29 }
 0x14e   :  { %2385 = vmatprep.subr.bf16.mxu0 %v2983_v19  ;;  %2409 = vmatprep.subr.bf16.mxu1 %v2855_v40 }
 0x151   :  { %2387 = vmatpush1.bf16.msra.mxu0 %v2996_v25  ;;  %2411 = vmatpush3.bf16.msra.mxu1 %v3014_v32 }
 0x152   :  { %2413 = vmatprep.subr.bf16.mxu0 %v2890_v12  ;;  %2444 = vmatprep.subr.bf16.mxu1 %v2855_v40 }
 0x207   :  { %v592_v41 = vpop.f32.mrb[2].mxu0  ;;  %v663_v45 = vpop.f32.mrb[10].mxu1 }
 0x208   :  { %v2718_v60 = vadd.f32 %v592_v41, %v3065_v61  ;;  %v594_v62 = vpop.f32.mrb[3].mxu0  ;;  %v1990_v2 = vpop.f32.mrb[11].mxu1  ;;  %v677_v18 = vadd.f32 %v663_v45, %v3075_v21 }
 0x209   :  { %v2719_v8 = vadd.f32 %v594_v62, %v3069_v5 }
 0x20a   :  { %v669_v4 = vmul.f32 0.5, %v2718_v60 }
 0x20b   :  { %v670_v9 = vmul.f32 0.5, %v2719_v8 }
 0x20c   :  { %2761 = vtanh.f32 %v669_v4 }
 0x20d   :  { %2763 = vtanh.f32 %v670_v9 }
 0x216   :  { %v2762_v10 = vpop.eup %2761 }
 0x217   :  { %v673_v13 = vmul.f32 0.5, %v2762_v10  ;;  %v2764_v23 = vpop.eup %2763 }
 0x218   :  { %v674_v28 = vmul.f32 0.5, %v2764_v23 }
 0x219   :  { %v675_v17 = vadd.f32 0.5, %v673_v13 }
 0x21a   :  { %v676_v30 = vadd.f32 0.5, %v674_v28 }
 0x21b   :  { %v678_v20 = vmul.f32 %v677_v18, %v675_v17 }
 0x21c   :  { %v681_v31 = vsub.f32 1.0, %v676_v30  ;;  %v683_v38 = vmul.f32 %v676_v30, %v525_v57 }
 0x21d   :  { %v679_v27 = vadd.f32 %v678_v20, %v3055_v43 }
 0x21f   :  { %2765 = vtanh.f32 %v679_v27 }
 0x229   :  { %v2766_v34 = vpop.eup %2765 }
 0x22a   :  { %v682_v36 = vmul.f32 %v2766_v34, %v681_v31 }
 0x22c   :  { %v684_v39 = vadd.f32 %v683_v38, %v682_v36 }
 0x22e   :  { %750 = vmatmul.mubr.f32.vlgmr.msra.gmra.mrb[4].mxu0 %v684_v39  ;;  %2024 = vmatmul.mubr.f32.vlgmr.msra.gmra.mrb[12].mxu1 %v684_v39 }
 0x22f   :  { %2415 = vmatpush1.bf16.msra.mxu0 %v2892_v15  ;;  %2446 = vmatpush3.bf16.msra.mxu1 %v2909_v33 }
 0x230   :  { %2417 = vmatprep.subr.bf16.mxu0 %v2895_v16  ;;  %2447 = vmatprep.subr.bf16.mxu1 %v2855_v40 }
 0x231   :  { %908 = vmatprep.mubr.f32.mxu0 %v2854_v0  ;;  %2058 = vmatprep.mubr.msk.f32.mxu1 %vm2856_vm1, %v2854_v0 }
 0x233   :  { %2419 = vmatpush1.bf16.msra.mxu0 %v2903_v24  ;;  %2449 = vmatpush3.bf16.msra.mxu1 %v2925_v44 }
 0x234   :  { %2421 = vmatprep.subr.bf16.mxu0 %v2906_v26  ;;  %2450 = vmatprep.subr.bf16.mxu1 %v2855_v40 }
 0x237   :  { %2423 = vmatpush1.bf16.msra.mxu0 %v2916_v35  ;;  %2452 = vmatpush3.bf16.msra.mxu1 %v2941_v54 }
 0x238   :  { %2425 = vmatprep.subr.bf16.mxu0 %v2919_v37  ;;  %2453 = vmatprep.subr.bf16.mxu1 %v2855_v40 }
 0x23b   :  { %2427 = vmatpush1.bf16.msra.mxu0 %v2932_v46  ;;  %2455 = vmatpush3.bf16.msra.mxu1 %v2957_v1 }
 0x23c   :  { %2429 = vmatprep.subr.bf16.mxu0 %v2935_v49  ;;  %2456 = vmatprep.subr.bf16.mxu1 %v2855_v40 }
 0x23f   :  { %2431 = vmatpush1.bf16.msra.mxu0 %v2948_v56  ;;  %2458 = vmatpush3.bf16.msra.mxu1 %v2973_v11 }
 0x240   :  { %2433 = vmatprep.subr.bf16.mxu0 %v2951_v59  ;;  %2459 = vmatprep.subr.bf16.mxu1 %v2855_v40 }
 0x243   :  { %2435 = vmatpush1.bf16.msra.mxu0 %v2964_v3  ;;  %2461 = vmatpush3.bf16.msra.mxu1 %v2989_v22 }
 0x244   :  { %2437 = vmatprep.subr.bf16.mxu0 %v2967_v6  ;;  %2462 = vmatprep.subr.bf16.mxu1 %v2855_v40 }
 0x247   :  { %2439 = vmatpush1.bf16.msra.mxu0 %v2980_v14  ;;  %2464 = vmatpush3.bf16.msra.mxu1 %v3003_v29 }
 0x248   :  { %2441 = vmatprep.subr.bf16.mxu0 %v2983_v19  ;;  %2465 = vmatprep.subr.bf16.mxu1 %v2855_v40 }
 0x24b   :  { %2443 = vmatpush1.bf16.msra.mxu0 %v2996_v25  ;;  %2467 = vmatpush3.bf16.msra.mxu1 %v3014_v32 }
 0x24c   :  { %2469 = vmatprep.subr.bf16.mxu0 %v2890_v12  ;;  %2500 = vmatprep.subr.bf16.mxu1 %v2855_v40 }
 0x301   :  { %v751_v43 = vpop.f32.mrb[4].mxu0  ;;  %v822_v42 = vpop.f32.mrb[12].mxu1 }
 0x302   :  { %v2720_v47 = vadd.f32 %v751_v43, %v3065_v61  ;;  %v753_v50 = vpop.f32.mrb[5].mxu0  ;;  %v2025_v52 = vpop.f32.mrb[13].mxu1  ;;  %v836_v2 = vadd.f32 %v822_v42, %v3075_v21 }
 0x303   :  { %v2721_v57 = vadd.f32 %v753_v50, %v3069_v5 }
 0x304   :  { %v828_v55 = vmul.f32 0.5, %v2720_v47 }
 0x305   :  { %v829_v41 = vmul.f32 0.5, %v2721_v57 }
 0x306   :  { %2767 = vtanh.f32 %v828_v55 }
 0x307   :  { %2769 = vtanh.f32 %v829_v41 }
 0x310   :  { %v2768_v45 = vpop.eup %2767 }
 0x311   :  { %v832_v60 = vmul.f32 0.5, %v2768_v45  ;;  %v2770_v8 = vpop.eup %2769 }
 0x312   :  { %v833_v10 = vmul.f32 0.5, %v2770_v8 }
 0x313   :  { %v834_v62 = vadd.f32 0.5, %v832_v60 }
 0x314   :  { %v835_v13 = vadd.f32 0.5, %v833_v10 }
 0x315   :  { %v837_v4 = vmul.f32 %v836_v2, %v834_v62 }
 0x316   :  { %v840_v17 = vsub.f32 1.0, %v835_v13  ;;  %v842_v23 = vmul.f32 %v835_v13, %v684_v39 }
 0x317   :  { %v838_v9 = vadd.f32 %v837_v4, %v3059_v51 }
 0x319   :  { %2771 = vtanh.f32 %v838_v9 }
 0x323   :  { %v2772_v18 = vpop.eup %2771 }
 0x324   :  { %v841_v20 = vmul.f32 %v2772_v18, %v840_v17 }
 0x326   :  { %v843_v27 = vadd.f32 %v842_v23, %v841_v20 }
 0x328   :  { %909 = vmatmul.mubr.f32.vlgmr.msra.gmra.mrb[6].mxu0 %v843_v27  ;;  %2059 = vmatmul.mubr.f32.vlgmr.msra.gmra.mrb[14].mxu1 %v843_v27 }
 0x329   :  { %2471 = vmatpush1.bf16.msra.mxu0 %v2892_v15  ;;  %2502 = vmatpush3.bf16.msra.mxu1 %v2909_v33 }
 0x32a   :  { %2473 = vmatprep.subr.bf16.mxu0 %v2895_v16  ;;  %2503 = vmatprep.subr.bf16.mxu1 %v2855_v40 }
 0x32b   :  { %1067 = vmatprep.mubr.f32.mxu0 %v2854_v0  ;;  %2093 = vmatprep.mubr.msk.f32.mxu1 %vm2856_vm1, %v2854_v0 }
 0x32d   :  { %2475 = vmatpush1.bf16.msra.mxu0 %v2903_v24  ;;  %2505 = vmatpush3.bf16.msra.mxu1 %v2925_v44 }
 0x32e   :  { %2477 = vmatprep.subr.bf16.mxu0 %v2906_v26  ;;  %2506 = vmatprep.subr.bf16.mxu1 %v2855_v40 }
 0x331   :  { %2479 = vmatpush1.bf16.msra.mxu0 %v2916_v35  ;;  %2508 = vmatpush3.bf16.msra.mxu1 %v2941_v54 }
 0x332   :  { %2481 = vmatprep.subr.bf16.mxu0 %v2919_v37  ;;  %2509 = vmatprep.subr.bf16.mxu1 %v2855_v40 }
 0x335   :  { %2483 = vmatpush1.bf16.msra.mxu0 %v2932_v46  ;;  %2511 = vmatpush3.bf16.msra.mxu1 %v2957_v1 }
 0x336   :  { %2485 = vmatprep.subr.bf16.mxu0 %v2935_v49  ;;  %2512 = vmatprep.subr.bf16.mxu1 %v2855_v40 }
 0x339   :  { %2487 = vmatpush1.bf16.msra.mxu0 %v2948_v56  ;;  %2514 = vmatpush3.bf16.msra.mxu1 %v2973_v11 }
 0x33a   :  { %2489 = vmatprep.subr.bf16.mxu0 %v2951_v59  ;;  %2515 = vmatprep.subr.bf16.mxu1 %v2855_v40 }
 0x33d   :  { %2491 = vmatpush1.bf16.msra.mxu0 %v2964_v3  ;;  %2517 = vmatpush3.bf16.msra.mxu1 %v2989_v22 }
 0x33e   :  { %2493 = vmatprep.subr.bf16.mxu0 %v2967_v6  ;;  %2518 = vmatprep.subr.bf16.mxu1 %v2855_v40 }
 0x341   :  { %2495 = vmatpush1.bf16.msra.mxu0 %v2980_v14  ;;  %2520 = vmatpush3.bf16.msra.mxu1 %v3003_v29 }
 0x342   :  { %2497 = vmatprep.subr.bf16.mxu0 %v2983_v19  ;;  %2521 = vmatprep.subr.bf16.mxu1 %v2855_v40 }
 0x345   :  { %2499 = vmatpush1.bf16.msra.mxu0 %v2996_v25  ;;  %2523 = vmatpush3.bf16.msra.mxu1 %v3014_v32 }
 0x346   :  { %2525 = vmatprep.subr.bf16.mxu0 %v2890_v12  ;;  %2556 = vmatprep.subr.bf16.mxu1 %v2855_v40 }
 0x3fb   :  { %v910_v51 = vpop.f32.mrb[6].mxu0  ;;  %v981_v28 = vpop.f32.mrb[14].mxu1 }
 0x3fc   :  { %v2722_v30 = vadd.f32 %v910_v51, %v3065_v61  ;;  %v912_v31 = vpop.f32.mrb[7].mxu0  ;;  %v2060_v34 = vpop.f32.mrb[15].mxu1  ;;  %v995_v50 = vadd.f32 %v981_v28, %v3075_v21 }
 0x3fd   :  { %v2723_v38 = vadd.f32 %v912_v31, %v3069_v5 }
 0x3fe   :  { %v987_v36 = vmul.f32 0.5, %v2722_v30 }
 0x3ff   :  { %v988_v39 = vmul.f32 0.5, %v2723_v38 }
 0x400   :  { %2773 = vtanh.f32 %v987_v36 }
 0x401   :  { %2775 = vtanh.f32 %v988_v39 }
 0x40a   :  { %v2774_v43 = vpop.eup %2773 }
 0x40b   :  { %v991_v42 = vmul.f32 0.5, %v2774_v43  ;;  %v2776_v55 = vpop.eup %2775 }
 0x40c   :  { %v992_v41 = vmul.f32 0.5, %v2776_v55 }
 0x40d   :  { %v993_v47 = vadd.f32 0.5, %v991_v42 }
 0x40e   :  { %v994_v45 = vadd.f32 0.5, %v992_v41 }
 0x40f   :  { %v996_v52 = vmul.f32 %v995_v50, %v993_v47 }
 0x410   :  { %v999_v60 = vsub.f32 1.0, %v994_v45  ;;  %v1001_v4 = vmul.f32 %v994_v45, %v843_v27 }
 0x411   :  { %v997_v57 = vadd.f32 %v996_v52, %v3057_v48 }
 0x413   :  { %2777 = vtanh.f32 %v997_v57 }
 0x41d   :  { %v2778_v62 = vpop.eup %2777 }
 0x41e   :  { %v1000_v2 = vmul.f32 %v2778_v62, %v999_v60 }
 0x420   :  { %v1002_v8 = vadd.f32 %v1001_v4, %v1000_v2 }
 0x422   :  { %1068 = vmatmul.mubr.f32.vlgmr.msra.gmra.mrb[8].mxu0 %v1002_v8  ;;  %2094 = vmatmul.mubr.f32.vlgmr.msra.gmra.mrb[16].mxu1 %v1002_v8 }
 0x423   :  { %2527 = vmatpush1.bf16.msra.mxu0 %v2892_v15  ;;  %2558 = vmatpush3.bf16.msra.mxu1 %v2909_v33 }
 0x424   :  { %2529 = vmatprep.subr.bf16.mxu0 %v2895_v16  ;;  %2559 = vmatprep.subr.bf16.mxu1 %v2855_v40 }
 0x425   :  { %1226 = vmatprep.mubr.f32.mxu0 %v2854_v0  ;;  %2128 = vmatprep.mubr.msk.f32.mxu1 %vm2856_vm1, %v2854_v0 }
 0x427   :  { %2531 = vmatpush1.bf16.msra.mxu0 %v2903_v24  ;;  %2561 = vmatpush3.bf16.msra.mxu1 %v2925_v44 }
 0x428   :  { %2533 = vmatprep.subr.bf16.mxu0 %v2906_v26  ;;  %2562 = vmatprep.subr.bf16.mxu1 %v2855_v40 }
 0x42b   :  { %2535 = vmatpush1.bf16.msra.mxu0 %v2916_v35  ;;  %2564 = vmatpush3.bf16.msra.mxu1 %v2941_v54 }
 0x42c   :  { %2537 = vmatprep.subr.bf16.mxu0 %v2919_v37  ;;  %2565 = vmatprep.subr.bf16.mxu1 %v2855_v40 }
 0x42f   :  { %2539 = vmatpush1.bf16.msra.mxu0 %v2932_v46  ;;  %2567 = vmatpush3.bf16.msra.mxu1 %v2957_v1 }
 0x430   :  { %2541 = vmatprep.subr.bf16.mxu0 %v2935_v49  ;;  %2568 = vmatprep.subr.bf16.mxu1 %v2855_v40 }
 0x433   :  { %2543 = vmatpush1.bf16.msra.mxu0 %v2948_v56  ;;  %2570 = vmatpush3.bf16.msra.mxu1 %v2973_v11 }
 0x434   :  { %2545 = vmatprep.subr.bf16.mxu0 %v2951_v59  ;;  %2571 = vmatprep.subr.bf16.mxu1 %v2855_v40 }
 0x437   :  { %2547 = vmatpush1.bf16.msra.mxu0 %v2964_v3  ;;  %2573 = vmatpush3.bf16.msra.mxu1 %v2989_v22 }
 0x438   :  { %2549 = vmatprep.subr.bf16.mxu0 %v2967_v6  ;;  %2574 = vmatprep.subr.bf16.mxu1 %v2855_v40 }
 0x43b   :  { %2551 = vmatpush1.bf16.msra.mxu0 %v2980_v14  ;;  %2576 = vmatpush3.bf16.msra.mxu1 %v3003_v29 }
 0x43c   :  { %2553 = vmatprep.subr.bf16.mxu0 %v2983_v19  ;;  %2577 = vmatprep.subr.bf16.mxu1 %v2855_v40 }
 0x43f   :  { %2555 = vmatpush1.bf16.msra.mxu0 %v2996_v25  ;;  %2579 = vmatpush3.bf16.msra.mxu1 %v3014_v32 }
 0x440   :  { %2581 = vmatprep.subr.bf16.mxu0 %v2890_v12  ;;  %2612 = vmatprep.subr.bf16.mxu1 %v2855_v40 }
 0x4f5   :  { %v1069_v48 = vpop.f32.mrb[8].mxu0  ;;  %v1140_v9 = vpop.f32.mrb[16].mxu1 }
 0x4f6   :  { %v2724_v10 = vadd.f32 %v1069_v48, %v3065_v61  ;;  %v1071_v13 = vpop.f32.mrb[9].mxu0  ;;  %v2095_v17 = vpop.f32.mrb[17].mxu1  ;;  %v1154_v30 = vadd.f32 %v1140_v9, %v3075_v21 }
 0x4f7   :  { %v2725_v20 = vadd.f32 %v1071_v13, %v3069_v5 }
 0x4f8   :  { %v1146_v18 = vmul.f32 0.5, %v2724_v10 }
 0x4f9   :  { %v1147_v23 = vmul.f32 0.5, %v2725_v20 }
 0x4fa   :  { %2779 = vtanh.f32 %v1146_v18 }
 0x4fb   :  { %2781 = vtanh.f32 %v1147_v23 }
 0x504   :  { %v2780_v27 = vpop.eup %2779 }
 0x505   :  { %v1150_v51 = vmul.f32 0.5, %v2780_v27  ;;  %v2782_v34 = vpop.eup %2781 }
 0x506   :  { %v1151_v38 = vmul.f32 0.5, %v2782_v34 }
 0x507   :  { %v1152_v28 = vadd.f32 0.5, %v1150_v51 }
 0x508   :  { %v1153_v39 = vadd.f32 0.5, %v1151_v38  ;;  %v85_v38 = vld [vmem:[#allocation2 + $0x228] sm:$0xff] }
 0x509   :  { %v1155_v31 = vmul.f32 %v1154_v30, %v1152_v28 }
 0x50a   :  { %v1158_v43 = vsub.f32 1.0, %v1153_v39  ;;  %v1160_v50 = vmul.f32 %v1153_v39, %v1002_v8 }
 0x50b   :  { %v1156_v36 = vadd.f32 %v1155_v31, %v3063_v58  ;;  %v83_v31 = vld [vmem:[#allocation2 + $0x1f8] sm:$0xff] }
 0x50d   :  { %2783 = vtanh.f32 %v1156_v36  ;;  %v84_v36 = vld [vmem:[#allocation2 + $0x210] sm:$0xff] }
 0x50e   :  { %v2699_v39 = vpack.c.bf16 %v85_v38, %v84_v36 }
 0x517   :  { %v2784_v42 = vpop.eup %2783 }
 0x518   :  { %v1159_v47 = vmul.f32 %v2784_v42, %v1158_v43  ;;  %v86_v43 = vld [vmem:[#allocation2 + $0x240] sm:$0xff] }
 0x51a   :  { %v1161_v52 = vadd.f32 %v1160_v50, %v1159_v47  ;;  %v88_v47 = vld [vmem:[#allocation2 + $0x270] sm:$0xff]  ;;  %v89_v50 = vld [vmem:[#allocation2 + $0x288] sm:$0xff] }
 0x51c   :  { %1227 = vmatmul.mubr.f32.vlgmr.msra.gmra.mrb[10].mxu0 %v1161_v52  ;;  %2129 = vmatmul.mubr.f32.vlgmr.msra.gmra.mrb[18].mxu1 %v1161_v52 }
 0x51d   :  { %2583 = vmatpush1.bf16.msra.mxu0 %v2892_v15  ;;  %2614 = vmatpush3.bf16.msra.mxu1 %v2909_v33 }
 0x51e   :  { %2585 = vmatprep.subr.bf16.mxu0 %v2895_v16  ;;  %2615 = vmatprep.subr.bf16.mxu1 %v2855_v40 }
 0x51f   :  { %1385 = vmatprep.mubr.f32.mxu0 %v2854_v0  ;;  %2163 = vmatprep.mubr.msk.f32.mxu1 %vm2856_vm1, %v2854_v0 }
 0x521   :  { %2587 = vmatpush1.bf16.msra.mxu0 %v2903_v24  ;;  %2617 = vmatpush3.bf16.msra.mxu1 %v2925_v44 }
 0x522   :  { %2589 = vmatprep.subr.bf16.mxu0 %v2906_v26  ;;  %2618 = vmatprep.subr.bf16.mxu1 %v2855_v40 }
 0x525   :  { %2591 = vmatpush1.bf16.msra.mxu0 %v2916_v35  ;;  %2620 = vmatpush3.bf16.msra.mxu1 %v2941_v54 }
 0x526   :  { %2593 = vmatprep.subr.bf16.mxu0 %v2919_v37  ;;  %2621 = vmatprep.subr.bf16.mxu1 %v2855_v40 }
 0x529   :  { %2595 = vmatpush1.bf16.msra.mxu0 %v2932_v46  ;;  %2623 = vmatpush3.bf16.msra.mxu1 %v2957_v1 }
 0x52a   :  { %2597 = vmatprep.subr.bf16.mxu0 %v2935_v49  ;;  %2624 = vmatprep.subr.bf16.mxu1 %v2855_v40 }
 0x52d   :  { %2599 = vmatpush1.bf16.msra.mxu0 %v2948_v56  ;;  %2626 = vmatpush3.bf16.msra.mxu1 %v2973_v11 }
 0x52e   :  { %2601 = vmatprep.subr.bf16.mxu0 %v2951_v59  ;;  %2627 = vmatprep.subr.bf16.mxu1 %v2855_v40 }
 0x531   :  { %2603 = vmatpush1.bf16.msra.mxu0 %v2964_v3  ;;  %2629 = vmatpush3.bf16.msra.mxu1 %v2989_v22 }
 0x532   :  { %2605 = vmatprep.subr.bf16.mxu0 %v2967_v6  ;;  %2630 = vmatprep.subr.bf16.mxu1 %v2855_v40 }
 0x535   :  { %2607 = vmatpush1.bf16.msra.mxu0 %v2980_v14  ;;  %2632 = vmatpush3.bf16.msra.mxu1 %v3003_v29 }
 0x536   :  { %2609 = vmatprep.subr.bf16.mxu0 %v2983_v19  ;;  %2633 = vmatprep.subr.bf16.mxu1 %v2855_v40 }
 0x539   :  { %2611 = vmatpush1.bf16.msra.mxu0 %v2996_v25  ;;  %2635 = vmatpush3.bf16.msra.mxu1 %v3014_v32 }
 0x53a   :  { %2637 = vmatprep.subr.bf16.mxu0 %v2890_v12  ;;  %2668 = vmatprep.subr.bf16.mxu1 %v2855_v40 }
 0x5ef   :  { %v1228_v58 = vpop.f32.mrb[10].mxu0  ;;  %v1299_v55 = vpop.f32.mrb[18].mxu1 }
 0x5f0   :  { %v2726_v57 = vadd.f32 %v1228_v58, %v3065_v61  ;;  %v1230_v41 = vpop.f32.mrb[11].mxu0  ;;  %v2130_v45 = vpop.f32.mrb[19].mxu1  ;;  %v1313_v9 = vadd.f32 %v1299_v55, %v3075_v21  ;;  %v90_v58 = vld [vmem:[#allocation2 + $0x2a0] sm:$0xff]  ;;  %v91_v55 = vld [vmem:[#allocation2 + $0x2b8] sm:$0xff] }
 0x5f1   :  { %v2727_v62 = vadd.f32 %v1230_v41, %v3069_v5  ;;  %v92_v41 = vld [vmem:[#allocation2 + $0x2d0] sm:$0xff]  ;;  %v93_v45 = vld [vmem:[#allocation2 + $0x2e8] sm:$0xff] }
 0x5f2   :  { %v1305_v60 = vmul.f32 0.5, %v2726_v57  ;;  %v2708_v57 = vpack.c.bf16 %v91_v55, %v90_v58 }
 0x5f3   :  { %v1306_v2 = vmul.f32 0.5, %v2727_v62  ;;  %v94_v62 = vld [vmem:[#allocation2 + $0x300] sm:$0xff] }
 0x5f4   :  { %2785 = vtanh.f32 %v1305_v60  ;;  %v2711_v60 = vpack.c.bf16 %v93_v45, %v92_v41 }
 0x5f5   :  { %2787 = vtanh.f32 %v1306_v2  ;;  %v95_v2 = vld [vmem:[#allocation2 + $0x318] sm:$0xff] }
 0x5fe   :  { %v2786_v4 = vpop.eup %2785 }
 0x5ff   :  { %v1309_v8 = vmul.f32 0.5, %v2786_v4  ;;  %v2788_v10 = vpop.eup %2787  ;;  %v2714_v4 = vpack.c.bf16 %v95_v2, %v94_v62 }
 0x600   :  { %v1310_v17 = vmul.f32 0.5, %v2788_v10 }
 0x601   :  { %v1311_v48 = vadd.f32 0.5, %v1309_v8 }
 0x602   :  { %v1312_v18 = vadd.f32 0.5, %v1310_v17 }
 0x603   :  { %v1314_v12 = vmul.f32 %v1313_v9, %v1311_v48 }
 0x604   :  { %v1317_v20 = vsub.f32 1.0, %v1312_v18  ;;  %v1319_v51 = vmul.f32 %v1312_v18, %v1161_v52  ;;  %v2705_v52 = vpack.c.bf16 %v89_v50, %v88_v47 }
 0x605   :  { %v1315_v13 = vadd.f32 %v1314_v12, %v3061_v53  ;;  %v81_v53 = vld [vmem:[#allocation2 + $0x1c8] sm:$0xff] }
 0x607   :  { %2789 = vtanh.f32 %v1315_v13 }
 0x611   :  { %v2790_v23 = vpop.eup %2789 }
 0x612   :  { %v1318_v27 = vmul.f32 %v2790_v23, %v1317_v20 }
 0x614   :  { %v1320_v28 = vadd.f32 %v1319_v51, %v1318_v27 }
 0x616   :  { %1386 = vmatmul.mubr.f32.vlgmr.msra.gmra.mrb[12].mxu0 %v1320_v28  ;;  %2164 = vmatmul.mubr.f32.vlgmr.msra.gmra.mrb[20].mxu1 %v1320_v28 }
 0x617   :  { %2639 = vmatpush1.bf16.msra.mxu0 %v2892_v15  ;;  %2670 = vmatpush3.bf16.msra.mxu1 %v2909_v33 }
 0x618   :  { %2641 = vmatprep.subr.bf16.mxu0 %v2895_v16  ;;  %2671 = vmatprep.subr.bf16.mxu1 %v2855_v40 }
 0x619   :  { %1544 = vmatprep.mubr.f32.mxu0 %v2854_v0  ;;  %2198 = vmatprep.mubr.msk.f32.mxu1 %vm2856_vm1, %v2854_v0 }
 0x61b   :  { %2643 = vmatpush1.bf16.msra.mxu0 %v2903_v24  ;;  %2673 = vmatpush3.bf16.msra.mxu1 %v2925_v44 }
 0x61c   :  { %2645 = vmatprep.subr.bf16.mxu0 %v2906_v26  ;;  %2674 = vmatprep.subr.bf16.mxu1 %v2855_v40 }
 0x61f   :  { %2647 = vmatpush1.bf16.msra.mxu0 %v2916_v35  ;;  %2676 = vmatpush3.bf16.msra.mxu1 %v2941_v54 }
 0x620   :  { %2649 = vmatprep.subr.bf16.mxu0 %v2919_v37  ;;  %2677 = vmatprep.subr.bf16.mxu1 %v2855_v40 }
 0x623   :  { %2651 = vmatpush1.bf16.msra.mxu0 %v2932_v46  ;;  %2679 = vmatpush3.bf16.msra.mxu1 %v2957_v1 }
 0x624   :  { %2653 = vmatprep.subr.bf16.mxu0 %v2935_v49  ;;  %2680 = vmatprep.subr.bf16.mxu1 %v2855_v40 }
 0x627   :  { %2655 = vmatpush1.bf16.msra.mxu0 %v2948_v56  ;;  %2682 = vmatpush3.bf16.msra.mxu1 %v2973_v11 }
 0x628   :  { %2657 = vmatprep.subr.bf16.mxu0 %v2951_v59  ;;  %2683 = vmatprep.subr.bf16.mxu1 %v2855_v40 }
 0x62b   :  { %2659 = vmatpush1.bf16.msra.mxu0 %v2964_v3  ;;  %2685 = vmatpush3.bf16.msra.mxu1 %v2989_v22 }
 0x62c   :  { %2661 = vmatprep.subr.bf16.mxu0 %v2967_v6  ;;  %2686 = vmatprep.subr.bf16.mxu1 %v2855_v40 }
 0x62f   :  { %2663 = vmatpush1.bf16.msra.mxu0 %v2980_v14  ;;  %2688 = vmatpush3.bf16.msra.mxu1 %v3003_v29 }
 0x630   :  { %2665 = vmatprep.subr.bf16.mxu0 %v2983_v19  ;;  %2689 = vmatprep.subr.bf16.mxu1 %v2855_v40 }
 0x633   :  { %2667 = vmatpush1.bf16.msra.mxu0 %v2996_v25  ;;  %2691 = vmatpush3.bf16.msra.mxu1 %v3014_v32  ;;  %v80_v32 = vld [vmem:[#allocation2 + $0x1b0] sm:$0xff] }
 0x634   :  { %2692 = vmatprep.subr.bf16.mxu0 %v2855_v40  ;;  %v2693_v30 = vpack.c.bf16 %v81_v53, %v80_v32 }
 0x6e9   :  { %v1387_v15 = vpop.f32.mrb[12].mxu0  ;;  %v1458_v16 = vpop.f32.mrb[20].mxu1 }
 0x6ea   :  { %v2728_v24 = vadd.f32 %v1387_v15, %v3065_v61  ;;  %v1389_v26 = vpop.f32.mrb[13].mxu0  ;;  %v2165_v33 = vpop.f32.mrb[21].mxu1  ;;  %v1472_v56 = vadd.f32 %v1458_v16, %v3075_v21 }
 0x6eb   :  { %v2729_v37 = vadd.f32 %v1389_v26, %v3069_v5 }
 0x6ec   :  { %v1464_v35 = vmul.f32 0.5, %v2728_v24 }
 0x6ed   :  { %v1465_v44 = vmul.f32 0.5, %v2729_v37  ;;  %v99_v37 = vld [vmem:[#allocation2 + $0x360] ss:$0 sm:$0xff] }
 0x6ee   :  { %2791 = vtanh.f32 %v1464_v35 }
 0x6ef   :  { %2793 = vtanh.f32 %v1465_v44 }
 0x6f8   :  { %v2792_v46 = vpop.eup %2791 }
 0x6f9   :  { %v1468_v49 = vmul.f32 0.5, %v2792_v46  ;;  %v2794_v1 = vpop.eup %2793 }
 0x6fa   :  { %v1469_v6 = vmul.f32 0.5, %v2794_v1 }
 0x6fb   :  { %v1470_v54 = vadd.f32 0.5, %v1468_v49 }
 0x6fc   :  { %v1471_v11 = vadd.f32 0.5, %v1469_v6 }
 0x6fd   :  { %v1473_v59 = vmul.f32 %v1472_v56, %v1470_v54 }
 0x6fe   :  { %v1476_v14 = vsub.f32 1.0, %v1471_v11  ;;  %v1478_v25 = vmul.f32 %v1471_v11, %v1320_v28 }
 0x6ff   :  { %v1474_v3 = vadd.f32 %v1473_v59, %v3071_v7  ;;  %v82_v7 = vld [vmem:[#allocation2 + $0x1e0] sm:$0xff] }
 0x700   :  { %v2696_v34 = vpack.c.bf16 %v83_v31, %v82_v7 }
 0x701   :  { %2795 = vtanh.f32 %v1474_v3 }
 0x70b   :  { %v2796_v19 = vpop.eup %2795 }
 0x70c   :  { %v1477_v22 = vmul.f32 %v2796_v19, %v1476_v14 }
 0x70e   :  { %v3311_v29 = vadd.f32 %v1478_v25, %v1477_v22 }
 0x710   :  { %1545 = vmatmul.mubr.f32.vlgmr.msra.gmra.mrb[14].mxu0 %v3311_v29  ;;  %2199 = vmatmul.mubr.f32.vlgmr.msra.gmra.mrb[22].mxu1 %v3311_v29 }
 0x711   :  { %2233 = vmatprep.mubr.msk.f32.mxu0 %vm2856_vm1, %v2854_v0  ;;  %2694 = vmatpush3.bf16.msra.mxu0 %v2693_v30  ;;  %v87_v0 = vld [vmem:[#allocation2 + $0x258] sm:$0xff] }
 0x712   :  { %2695 = vmatprep.subr.bf16.mxu0 %v2855_v40  ;;  %v2702_v42 = vpack.c.bf16 %v87_v0, %v86_v43 }
 0x715   :  { %2697 = vmatpush3.bf16.msra.mxu0 %v2696_v34 }
 0x716   :  { %2698 = vmatprep.subr.bf16.mxu0 %v2855_v40 }
 0x719   :  { %2700 = vmatpush3.bf16.msra.mxu0 %v2699_v39 }
 0x71a   :  { %2701 = vmatprep.subr.bf16.mxu0 %v2855_v40 }
 0x71d   :  { %2703 = vmatpush3.bf16.msra.mxu0 %v2702_v42 }
 0x71e   :  { %2704 = vmatprep.subr.bf16.mxu0 %v2855_v40 }
 0x721   :  { %2706 = vmatpush3.bf16.msra.mxu0 %v2705_v52 }
 0x722   :  { %2707 = vmatprep.subr.bf16.mxu0 %v2855_v40 }
 0x725   :  { %2709 = vmatpush3.bf16.msra.mxu0 %v2708_v57 }
 0x726   :  { %2710 = vmatprep.subr.bf16.mxu0 %v2855_v40 }
 0x729   :  { %2712 = vmatpush3.bf16.msra.mxu0 %v2711_v60 }
 0x72a   :  { %2713 = vmatprep.subr.bf16.mxu0 %v2855_v40 }
 0x72d   :  { %2715 = vmatpush3.bf16.msra.mxu0 %v2714_v4 }
 0x7e3   :  { %v1546_v8 = vpop.f32.mrb[14].mxu0  ;;  %v1617_v48 = vpop.f32.mrb[22].mxu1 }
 0x7e4   :  { %v2730_v9 = vadd.f32 %v1546_v8, %v3065_v61  ;;  %v1548_v12 = vpop.f32.mrb[15].mxu0  ;;  %v2200_v10 = vpop.f32.mrb[23].mxu1  ;;  %v1631_v40 = vadd.f32 %v1617_v48, %v3075_v21 }
 0x7e5   :  { %v2731_v17 = vadd.f32 %v1548_v12, %v3069_v5 }
 0x7e6   :  { %v1623_v13 = vmul.f32 0.5, %v2730_v9 }
 0x7e7   :  { %v1624_v18 = vmul.f32 0.5, %v2731_v17 }
 0x7e8   :  { %2797 = vtanh.f32 %v1623_v13 }
 0x7e9   :  { %2799 = vtanh.f32 %v1624_v18 }
 0x7f2   :  { %v2798_v20 = vpop.eup %2797 }
 0x7f3   :  { %v1627_v23 = vmul.f32 0.5, %v2798_v20  ;;  %v2800_v28 = vpop.eup %2799 }
 0x7f4   :  { %v1628_v16 = vmul.f32 0.5, %v2800_v28 }
 0x7f5   :  { %v1629_v27 = vadd.f32 0.5, %v1627_v23 }
 0x7f6   :  { %v1630_v61 = vadd.f32 0.5, %v1628_v16 }
 0x7f7   :  { %v1632_v51 = vmul.f32 %v1631_v40, %v1629_v27 }
 0x7f8   :  { %v1635_v24 = vsub.f32 1.0, %v1630_v61  ;;  %v1637_v5 = vmul.f32 %v1630_v61, %v3311_v29 }
 0x7f9   :  { %v1633_v15 = vadd.f32 %v1632_v51, %v3067_v63 }
 0x7fb   :  { %2801 = vtanh.f32 %v1633_v15 }
 0x805   :  { %v2802_v26 = vpop.eup %2801 }
 0x806   :  { %v1636_v33 = vmul.f32 %v2802_v26, %v1635_v24 }
 0x808   :  { %v1638_v35 = vadd.f32 %v1637_v5, %v1636_v33 }
 0x80a   :  { %2234 = vmatmul.mubr.f32.vlgmr.msra.gmra.mrb[16].mxu0 %v1638_v35 }
 0x8dd   :  { %v1705_v44 = vpop.f32.mrb[16].mxu0 }
 0x8de   :  { %v1706_v46 = vadd.f32 %v1705_v44, %v99_v37  ;;  %v2235_v21 = vpop.f32.mrb[17].mxu0 }
 0x8e0   :  { %v1709_v49 = vmax.f32 %v1706_v46, 0.0 }
 0x8e2   :  { %1710 = vst [vmem:[#allocation5] sm:$0xff] %v1709_v49 }
 0x8e3   :  { %2836 = shalt.err (!%p2833_p12)
}
 0x8e4   :  { %s2837_s14 = scalar_lea.hbm %s3343_s2, 128 }
 0x8e5   :  { %p2838_p13 = scmp.ne.s32.totalorder %s3343_s2, %s2837_s14  ;;  %p2841_p0 = scmp.lt.u32.totalorder %s2837_s14, %s3343_s2 }
 0x8e7   :  { %p2843_p1 = pnand %p2841_p0, %p2838_p13 }
 0x8e9   :  { %2846 = shalt.err (!%p2843_p1)
}
 0x8ea   :  { %1720 = dma.vmem_to_hbm [thread:$0]  %s1718_s10, 128, %s3343_s2, [#allocation4]  }
 0x8eb   :  { %2849 = dma.done.wait [#allocation4], 128  }
 0x8ec   :  { %2850 = vsyncadd [#allocation4], 4294967168 }
 0x8ed   :  { %1724 = vsyncpa [#allocation3], 1 }
 0x8ee   :  { %1725 = vsyncpa [#allocation4], 1 }

</bundles_post_ra>
